<compile_context>
chip_gen: v5e
topology: v5e:2x2
jax: 0.10.0
libtpu: 0.0.40
codegen_flags: <defaults>
</compile_context>

<pallas_src>
import jax
import jax.numpy as jnp
from jax.experimental import pallas as pl
from jax.experimental.pallas import tpu as pltpu

D_IN, H, C, C_PAD = 784, 512, 10, 128


def mlp_kernel(x_ref, w1_ref, b1_ref, w2_ref, b2_ref, w3_ref, b3_ref, o_ref):
    # In-kernel f32 -> bf16 cast of the input tile (rides spare VALU slots under the MXU;
    # avoids a separate wrapper-side HBM pass over x).
    x = x_ref[...].astype(jnp.bfloat16)

    # fc1 + ReLU: bf16 operands, f32 MXU accumulate, bf16 elementwise epilogue.
    h1 = jnp.dot(x, w1_ref[...], preferred_element_type=jnp.float32)
    h1 = jnp.maximum(h1.astype(jnp.bfloat16) + b1_ref[...], 0)

    # fc2 + ReLU (bf16 activations feed straight back into the MXU).
    h2 = jnp.dot(h1, w2_ref[...], preferred_element_type=jnp.float32)
    h2 = jnp.maximum(h2.astype(jnp.bfloat16) + b2_ref[...], 0)

    # fc3 + softmax over the (padded) class dim — kept in f32. Padded classes carry bias
    # -1e30, so exp() underflows to 0 and they contribute nothing to the denominator.
    logits = jnp.dot(h2, w3_ref[...], preferred_element_type=jnp.float32) + b3_ref[...]
    m = jnp.max(logits, axis=-1, keepdims=True)
    e = jnp.exp(logits - m)
    denom = jnp.sum(e, axis=-1, keepdims=True)
    o_ref[...] = (e * pl.reciprocal(denom, approx=True)).astype(o_ref.dtype)


def _round_up(a, m):
    return ((a + m - 1) // m) * m


def _cdiv(a, b):
    return -(-a // b)


def mnist_net_forward(x_nchw, params, *, batch_tile=512):
    """x_nchw: (B, 1, 28, 28) float32. Returns (B, 10) softmax probabilities (f32)."""
    w1, b1, w2, b2, w3, b3 = params
    B = x_nchw.shape[0]

    # Flatten exactly like torch's x.view(-1, 784). No dtype cast here — the kernel casts
    # to bf16 internally, so this reshape is free (contiguous view) for XLA.
    x = x_nchw.reshape(B, D_IN).astype(jnp.float32)

    # Batch tile: multiple of 16 (bf16 sublane packing), capped by the (rounded-up) batch.
    tb = _round_up(min(batch_tile, _round_up(B, 16)), 16)
    n_tiles = _cdiv(B, tb)
    # v7x has 2 TensorCores: keep the parallel grid length even when it's > 1 so neither
    # core idles (harmless on single-TC v5e/v6e).
    if n_tiles > 1 and n_tiles % 2 == 1:
        n_tiles += 1
        tb = _round_up(_cdiv(B, n_tiles), 16)
    Bp = n_tiles * tb

    # Pad the batch only when needed (padded zero rows are computed and discarded —
    # zeros in, finite softmax out, no NaNs).
    if Bp != B:
        x = jnp.pad(x, ((0, Bp - B), (0, 0)))

    # bf16 weights + bf16 hidden biases (halves DMA + matches the bf16 epilogue); the fc3
    # bias stays f32 (logits/softmax path) and its class dim is padded to 128 with -1e30.
    w1b = w1.astype(jnp.bfloat16)
    w2b = w2.astype(jnp.bfloat16)
    w3b = jnp.pad(w3, ((0, 0), (0, C_PAD - C))).astype(jnp.bfloat16)
    b1b = b1.astype(jnp.bfloat16)
    b2b = b2.astype(jnp.bfloat16)
    b3f = jnp.pad(b3.astype(jnp.float32), ((0, 0), (0, C_PAD - C)),
                  constant_values=-1e30)

    grid = (n_tiles,)

    # Weights/biases are grid-invariant -> single-buffer them to reclaim VMEM.
    def const_spec(shape):
        return pl.BlockSpec(shape, lambda i: (0, 0),
                            pipeline_mode=pl.Buffered(buffer_count=1))

    flops = 2 * Bp * (D_IN * H + H * H + H * C_PAD)
    transcendentals = Bp * (C_PAD + 1)                      # exp + approx reciprocal
    bytes_accessed = (
        Bp * D_IN * 4                                       # x (f32, cast in-kernel)
        + (D_IN * H + H * H + H * C_PAD) * 2                # weights (bf16)
        + (H + H) * 2 + C_PAD * 4                           # biases
        + Bp * C_PAD * 2                                     # output (bf16)
    )

    out = pl.pallas_call(
        mlp_kernel,
        out_shape=jax.ShapeDtypeStruct((Bp, C_PAD), jnp.bfloat16),
        grid_spec=pltpu.PrefetchScalarGridSpec(
            num_scalar_prefetch=0,
            grid=grid,
            in_specs=[
                pl.BlockSpec((tb, D_IN), lambda i: (i, 0)),   # x: f32, tiled over batch
                const_spec((D_IN, H)),                        # w1 (bf16)
                const_spec((1, H)),                           # b1 (bf16)
                const_spec((H, H)),                           # w2 (bf16)
                const_spec((1, H)),                           # b2 (bf16)
                const_spec((H, C_PAD)),                       # w3 (bf16, class-padded)
                const_spec((1, C_PAD)),                       # b3 (f32, class-padded)
            ],
            out_specs=pl.BlockSpec((tb, C_PAD), lambda i: (i, 0)),
        ),
        compiler_params=pltpu.CompilerParams(
            dimension_semantics=("parallel",),
            vmem_limit_bytes=32 * 1024 * 1024,
        ),
        cost_estimate=pl.CostEstimate(
            flops=flops,
            transcendentals=transcendentals,
            bytes_accessed=bytes_accessed,
        ),
    )(x, w1b, b1b, w2b, b2b, w3b, b3f)

    # Slice back to real batch / 10 classes; tiny f32 cast for a clean downstream dtype.
    return out[:B, :C].astype(jnp.float32)


def init_params(key):
    """Deterministic synthetic parameters with the shapes implied by MnistNet.__init__."""
    k1, k2, k3, k4, k5, k6 = jax.random.split(key, 6)
    # Stored as (in, out); biases kept 2D (1, out) for clean TPU layout.
    w1 = jax.random.normal(k1, (D_IN, H), jnp.float32) * 0.02
    b1 = jax.random.normal(k2, (1, H), jnp.float32) * 0.01
    w2 = jax.random.normal(k3, (H, H), jnp.float32) * 0.02
    b2 = jax.random.normal(k4, (1, H), jnp.float32) * 0.01
    w3 = jax.random.normal(k5, (H, C), jnp.float32) * 0.02
    b3 = jax.random.normal(k6, (1, C), jnp.float32) * 0.01
    return (w1, b1, w2, b2, w3, b3)


if __name__ == "__main__":
    key = jax.random.PRNGKey(0)
    pkey, xkey = jax.random.split(key)
    params = init_params(pkey)

    B = 8
    x = jax.random.normal(xkey, (B, 1, 28, 28), jnp.float32)  # NCHW, like MNIST tensors

    probs = mnist_net_forward(x, params)
    probs = jax.block_until_ready(probs)

    # Sanity check against a plain-JAX f32 reference of the same forward pass.
    # Tolerances account for bf16 matmul inputs/epilogues (f32 accumulate), the bf16 output
    # store, and the EUP approximate reciprocal in the softmax.
    w1, b1, w2, b2, w3, b3 = params
    xf = x.reshape(B, D_IN)
    h1 = jnp.maximum(xf @ w1 + b1, 0.0)
    h2 = jnp.maximum(h1 @ w2 + b2, 0.0)
    ref = jax.nn.softmax(h2 @ w3 + b3, axis=1)

    assert probs.shape == (B, C)
    assert jnp.allclose(probs, ref, atol=2e-2, rtol=0.0)
    assert jnp.allclose(jnp.sum(probs, axis=1), 1.0, atol=1e-2)

    print("KERNEL_OK")
</pallas_src>

<mosaic_0001>
module attributes {stable_mosaic.version = 11 : i64} {
  func.func @mlp_kernel(%arg0: i32, %arg1: memref<16x784xf32, #tpu.memory_space<vmem>>, %arg2: memref<784x512xbf16, #tpu.memory_space<vmem>>, %arg3: memref<1x512xbf16, #tpu.memory_space<vmem>>, %arg4: memref<512x512xbf16, #tpu.memory_space<vmem>>, %arg5: memref<1x512xbf16, #tpu.memory_space<vmem>>, %arg6: memref<512x128xbf16, #tpu.memory_space<vmem>>, %arg7: memref<1x128xf32, #tpu.memory_space<vmem>>, %arg8: memref<16x128xbf16, #tpu.memory_space<vmem>>) attributes {dimension_semantics = [#tpu.dimension_semantics<parallel>], iteration_bounds = array<i64: 1>, scalar_prefetch = 0 : i64, scratch_operands = 0 : i64, tpu.core_type = #tpu.core_type<tc>, window_params = [{transform_indices = @transform_0, window_bounds = array<i64: 16, 784>}, {pipeline_mode = #tpu.pipeline_mode<synchronous>, transform_indices = @transform_1, window_bounds = array<i64: 784, 512>}, {pipeline_mode = #tpu.pipeline_mode<synchronous>, transform_indices = @transform_2, window_bounds = array<i64: 1, 512>}, {pipeline_mode = #tpu.pipeline_mode<synchronous>, transform_indices = @transform_3, window_bounds = array<i64: 512, 512>}, {pipeline_mode = #tpu.pipeline_mode<synchronous>, transform_indices = @transform_4, window_bounds = array<i64: 1, 512>}, {pipeline_mode = #tpu.pipeline_mode<synchronous>, transform_indices = @transform_5, window_bounds = array<i64: 512, 128>}, {pipeline_mode = #tpu.pipeline_mode<synchronous>, transform_indices = @transform_6, window_bounds = array<i64: 1, 128>}, {transform_indices = @transform_7, window_bounds = array<i64: 16, 128>}]} {
    %c0 = arith.constant 0 : index
    %c0_0 = arith.constant 0 : index
    %0 = vector.load %arg1[%c0, %c0_0] : memref<16x784xf32, #tpu.memory_space<vmem>>, vector<16x784xf32>
    %1 = arith.truncf %0 : vector<16x784xf32> to vector<16x784xbf16>
    %c0_1 = arith.constant 0 : index
    %c0_2 = arith.constant 0 : index
    %2 = vector.load %arg2[%c0_1, %c0_2] : memref<784x512xbf16, #tpu.memory_space<vmem>>, vector<784x512xbf16>
    %cst = arith.constant dense<0.000000e+00> : vector<16x512xf32>
    %3 = tpu.matmul %1, %2, %cst {dimension_numbers = #tpu.dot_dimension_numbers<[1], [0], [0], [1], [0, 0, 1, 1], [], []>} : vector<16x784xbf16>, vector<784x512xbf16>, vector<16x512xf32> -> vector<16x512xf32>
    %4 = arith.truncf %3 : vector<16x512xf32> to vector<16x512xbf16>
    %c0_3 = arith.constant 0 : index
    %c0_4 = arith.constant 0 : index
    %5 = vector.load %arg3[%c0_3, %c0_4] : memref<1x512xbf16, #tpu.memory_space<vmem>>, vector<1x512xbf16>
    %6 = vector.broadcast %5 : vector<1x512xbf16> to vector<16x512xbf16>
    %7 = arith.addf %4, %6 : vector<16x512xbf16>
    %cst_5 = arith.constant 0.000000e+00 : bf16
    %8 = vector.broadcast %cst_5 : bf16 to vector<16x512xbf16>
    %9 = arith.maximumf %7, %8 : vector<16x512xbf16>
    %c0_6 = arith.constant 0 : index
    %c0_7 = arith.constant 0 : index
    %10 = vector.load %arg4[%c0_6, %c0_7] : memref<512x512xbf16, #tpu.memory_space<vmem>>, vector<512x512xbf16>
    %cst_8 = arith.constant dense<0.000000e+00> : vector<16x512xf32>
    %11 = tpu.matmul %9, %10, %cst_8 {dimension_numbers = #tpu.dot_dimension_numbers<[1], [0], [0], [1], [0, 0, 1, 1], [], []>} : vector<16x512xbf16>, vector<512x512xbf16>, vector<16x512xf32> -> vector<16x512xf32>
    %12 = arith.truncf %11 : vector<16x512xf32> to vector<16x512xbf16>
    %c0_9 = arith.constant 0 : index
    %c0_10 = arith.constant 0 : index
    %13 = vector.load %arg5[%c0_9, %c0_10] : memref<1x512xbf16, #tpu.memory_space<vmem>>, vector<1x512xbf16>
    %14 = vector.broadcast %13 : vector<1x512xbf16> to vector<16x512xbf16>
    %15 = arith.addf %12, %14 : vector<16x512xbf16>
    %cst_11 = arith.constant 0.000000e+00 : bf16
    %16 = vector.broadcast %cst_11 : bf16 to vector<16x512xbf16>
    %17 = arith.maximumf %15, %16 : vector<16x512xbf16>
    %c0_12 = arith.constant 0 : index
    %c0_13 = arith.constant 0 : index
    %18 = vector.load %arg6[%c0_12, %c0_13] : memref<512x128xbf16, #tpu.memory_space<vmem>>, vector<512x128xbf16>
    %cst_14 = arith.constant dense<0.000000e+00> : vector<16x128xf32>
    %19 = tpu.matmul %17, %18, %cst_14 {dimension_numbers = #tpu.dot_dimension_numbers<[1], [0], [0], [1], [0, 0, 1, 1], [], []>} : vector<16x512xbf16>, vector<512x128xbf16>, vector<16x128xf32> -> vector<16x128xf32>
    %c0_15 = arith.constant 0 : index
    %c0_16 = arith.constant 0 : index
    %20 = vector.load %arg7[%c0_15, %c0_16] : memref<1x128xf32, #tpu.memory_space<vmem>>, vector<1x128xf32>
    %21 = vector.broadcast %20 : vector<1x128xf32> to vector<16x128xf32>
    %22 = arith.addf %19, %21 : vector<16x128xf32>
    %cst_17 = arith.constant dense<0xFF800000> : vector<16xf32>
    %23 = vector.multi_reduction <maximumf>, %22, %cst_17 [1] : vector<16x128xf32> to vector<16xf32>
    %24 = vector.shape_cast %23 : vector<16xf32> to vector<16x1xf32>
    %25 = vector.broadcast %24 : vector<16x1xf32> to vector<16x128xf32>
    %26 = arith.subf %22, %25 : vector<16x128xf32>
    %27 = math.exp %26 : vector<16x128xf32>
    %cst_18 = arith.constant dense<0.000000e+00> : vector<16xf32>
    %28 = vector.multi_reduction <add>, %27, %cst_18 [1] : vector<16x128xf32> to vector<16xf32>
    %29 = vector.shape_cast %28 : vector<16xf32> to vector<16x1xf32>
    %30 = tpu.reciprocal %29 {approx = true} : vector<16x1xf32> -> vector<16x1xf32>
    %31 = vector.broadcast %30 : vector<16x1xf32> to vector<16x128xf32>
    %32 = arith.mulf %27, %31 : vector<16x128xf32>
    %33 = arith.truncf %32 : vector<16x128xf32> to vector<16x128xbf16>
    %c0_19 = arith.constant 0 : index
    %c0_20 = arith.constant 0 : index
    %34 = vector.load %arg8[%c0_19, %c0_20] : memref<16x128xbf16, #tpu.memory_space<vmem>>, vector<16x128xbf16>
    tpu.vector_store %arg8[%c0_19, %c0_20], %33 {strides = array<i32>} : memref<16x128xbf16, #tpu.memory_space<vmem>>, vector<16x128xbf16>,
    return
  }
  func.func @transform_0(%arg0: i32) -> (i32, i32) {
    %c0_i32 = arith.constant 0 : i32
    %c0_i32_0 = arith.constant 0 : i32
    return %arg0, %c0_i32 : i32, i32
  }
  func.func @transform_1(%arg0: i32) -> (i32, i32) {
    %c0_i32 = arith.constant 0 : i32
    %c0_i32_0 = arith.constant 0 : i32
    %c0_i32_1 = arith.constant 0 : i32
    return %c0_i32, %c0_i32_0 : i32, i32
  }
  func.func @transform_2(%arg0: i32) -> (i32, i32) {
    %c0_i32 = arith.constant 0 : i32
    %c0_i32_0 = arith.constant 0 : i32
    %c0_i32_1 = arith.constant 0 : i32
    return %c0_i32, %c0_i32_0 : i32, i32
  }
  func.func @transform_3(%arg0: i32) -> (i32, i32) {
    %c0_i32 = arith.constant 0 : i32
    %c0_i32_0 = arith.constant 0 : i32
    %c0_i32_1 = arith.constant 0 : i32
    return %c0_i32, %c0_i32_0 : i32, i32
  }
  func.func @transform_4(%arg0: i32) -> (i32, i32) {
    %c0_i32 = arith.constant 0 : i32
    %c0_i32_0 = arith.constant 0 : i32
    %c0_i32_1 = arith.constant 0 : i32
    return %c0_i32, %c0_i32_0 : i32, i32
  }
  func.func @transform_5(%arg0: i32) -> (i32, i32) {
    %c0_i32 = arith.constant 0 : i32
    %c0_i32_0 = arith.constant 0 : i32
    %c0_i32_1 = arith.constant 0 : i32
    return %c0_i32, %c0_i32_0 : i32, i32
  }
  func.func @transform_6(%arg0: i32) -> (i32, i32) {
    %c0_i32 = arith.constant 0 : i32
    %c0_i32_0 = arith.constant 0 : i32
    %c0_i32_1 = arith.constant 0 : i32
    return %c0_i32, %c0_i32_0 : i32, i32
  }
  func.func @transform_7(%arg0: i32) -> (i32, i32) {
    %c0_i32 = arith.constant 0 : i32
    %c0_i32_0 = arith.constant 0 : i32
    return %arg0, %c0_i32 : i32, i32
  }
}

</mosaic_0001>

<bundles_post_ra>
// kernel: tpu_custom_call.1
= control target key start
LH: loop header
LB: loop body
LE: loop exit
PB: predicated region body
PF: predicated region fallthrough
CT: control target
= control target key end

     0   :  { %12 = vsyncpa [#allocation3], 0  ;;  %s5431_s0 = inlined_call_operand.hbm [shape: f32[16,784], index: 0, kind: input, shape index: {}]   ;;  %s5432_s1 = inlined_call_operand.hbm [shape: bf16[784,512], index: 1, kind: input, shape index: {}]   ;;  %s5433_s2 = inlined_call_operand.hbm [shape: bf16[1,512], index: 2, kind: input, shape index: {}]   ;;  %s5434_s3 = inlined_call_operand.hbm [shape: bf16[512,512], index: 3, kind: input, shape index: {}]   ;;  %s5435_s4 = inlined_call_operand.hbm [shape: bf16[1,512], index: 4, kind: input, shape index: {}]   ;;  %s5436_s5 = inlined_call_operand.hbm [shape: bf16[512,128], index: 5, kind: input, shape index: {}]   ;;  %s5437_s6 = inlined_call_operand.vmem [shape: f32[1,128], index: 6, kind: input, shape index: {}]   ;;  %s5438_s7 = inlined_call_operand.hbm [shape: bf16[16,128], index: 7, kind: output, shape index: {}]  }
   0x1   :  { %13 = vsyncpa [#allocation6], 0 }
   0x2   :  { %14 = vsyncpa [#allocation9], 0 }
   0x3   :  { %15 = vsyncpa [#allocation12], 0  ;;  %s34_s26 = sshll.u32 %s5432_s1, 4  ;;  %s35_s26 = int_to_ptr.hbm [resolvable:$true] %s34_s26 }
   0x4   :  { %16 = vsyncpa [#allocation4], 0  ;;  %s5186_s27 = smov [#allocation5]   ;;  %s58_s8 = sshll.u32 %s5434_s3, 4  ;;  %s59_s8 = int_to_ptr.hbm [resolvable:$true] %s58_s8 }
   0x5   :  { %s36_s28 = sshll.u32 %s5186_s27, 4  ;;  %s5187_s9 = smov 256   ;;  %s37_s28 = int_to_ptr.vmem [resolvable:$true] %s36_s28 }
   0x6   :  { %s5188_s10 = smov 16   ;;  %s5189_s11 = smov [#allocation8]  }
   0x7   :  { %42 = dma.hbm_to_vmem [thread:$0]  %s35_s26, 25088, %s37_s28, [#allocation6], %s5187_s9, %s5187_s9, %s5188_s10  }
   0x8   :  { %s60_s12 = sshll.u32 %s5189_s11, 4  ;;  %s21_s15 = sshll.u32 %s5431_s0, 4  ;;  %s61_s12 = int_to_ptr.vmem [resolvable:$true] %s60_s12  ;;  %s22_s15 = int_to_ptr.hbm [resolvable:$true] %s21_s15 }
   0x9   :  { %66 = dma.hbm_to_vmem [thread:$0]  %s59_s8, 16384, %s61_s12, [#allocation9], %s5187_s9, %s5187_s9, %s5188_s10  }
   0xa   :  { %s5190_s1 = smov [#allocation2]   ;;  %s48_s3 = sshll.u32 %s5433_s2, 4  ;;  %s49_s3 = int_to_ptr.hbm [resolvable:$true] %s48_s3 }
   0xb   :  { %s23_s16 = sshll.u32 %s5190_s1, 4  ;;  %s5191_s19 = smov 896   ;;  %s24_s16 = int_to_ptr.vmem [resolvable:$true] %s23_s16 }
   0xc   :  { %s5192_s20 = smov 56   ;;  %s5193_s21 = smov [#allocation7]  }
   0xd   :  { %29 = dma.hbm_to_vmem [thread:$0]  %s22_s15, 1792, %s24_s16, [#allocation3], %s5191_s19, %s5191_s19, %s5192_s20  }
   0xe   :  { %s50_s22 = sshll.u32 %s5193_s21, 4  ;;  %s72_s0 = sshll.u32 %s5435_s4, 4  ;;  %s51_s22 = int_to_ptr.vmem [resolvable:$true] %s50_s22  ;;  %s73_s0 = int_to_ptr.hbm [resolvable:$true] %s72_s0 }
   0xf   :  { %53 = dma.hbm_to_vmem [thread:$0]  %s49_s3, 64, %s51_s22, [#allocation6]  }
  0x10   :  { %s82_s27 = sshll.u32 %s5436_s5, 4  ;;  %s5194_s28 = smov [#allocation10]   ;;  %s83_s27 = int_to_ptr.hbm [resolvable:$true] %s82_s27 }
  0x11   :  { %s74_s29 = sshll.u32 %s5194_s28, 4  ;;  %s5195_s2 = smov [#allocation11]   ;;  %s75_s29 = int_to_ptr.vmem [resolvable:$true] %s74_s29 }
  0x12   :  { %77 = dma.hbm_to_vmem [thread:$0]  %s73_s0, 64, %s75_s29, [#allocation9]  }
  0x13   :  { %s84_s30 = sshll.u32 %s5195_s2, 4  ;;  %s5196_s8 = smov 64   ;;  %s85_s30 = int_to_ptr.vmem [resolvable:$true] %s84_s30 }
  0x14   :  { %s5197_s9 = smov 4  }
  0x15   :  { %90 = dma.hbm_to_vmem [thread:$0]  %s83_s27, 4096, %s85_s30, [#allocation12], %s5196_s8, %s5196_s8, %s5197_s9  }
  0x16   :  { %5176 = dma.done.wait [#allocation3], 1792  }
  0x17   :  { %5177 = vsyncadd [#allocation3], 4294965504 }
  0x18   :  { %5178 = dma.done.wait [#allocation6], 25152  }
  0x19   :  { %5179 = vsyncadd [#allocation6], 4294942144 }
  0x1a   :  { %5180 = dma.done.wait [#allocation9], 16448  }
  0x1b   :  { %5181 = vsyncadd [#allocation9], 4294950848 }
  0x1c   :  { %5182 = dma.done.wait [#allocation12], 4096  }
  0x1d   :  { %5183 = vsyncadd [#allocation12], 4294963200  ;;  %v3311_v0 = vld [vmem:[#allocation5 + $0xe0] sm:$0xf]  ;;  %v4655_v1 = vld [vmem:[#allocation5 + $0xec] sm:$0xf0] }
  0x1e   :  { %v3439_v2 = vld [vmem:[#allocation5 + $0x1e0] sm:$0xf]  ;;  %v3312_v3 = vor.u32 %v4655_v1, %v3311_v0  ;;  %v4687_v4 = vld [vmem:[#allocation5 + $0x1ec] sm:$0xf0]  ;;  %vm1315_vm0 = vcmask 130048   ;;  %s3181_s13 = sshll.u32 %s5438_s7, 4  ;;  %s3182_s13 = int_to_ptr.hbm [resolvable:$true] %s3181_s13 }
  0x1f   :  { %v3567_v5 = vld [vmem:[#allocation5 + $0x2e0] sm:$0xf]  ;;  %v4719_v6 = vld [vmem:[#allocation5 + $0x2ec] sm:$0xf0]  ;;  %v3440_v7 = vor.u32 %v4687_v4, %v3439_v2 }
  0x20   :  { %v3568_v8 = vor.u32 %v4719_v6, %v3567_v5  ;;  %v3695_v9 = vld [vmem:[#allocation5 + $0x3e0] sm:$0xf]  ;;  %v4751_v10 = vld [vmem:[#allocation5 + $0x3ec] sm:$0xf0]  ;;  %1319 = vmatpush.bf16.msra.mxu0 %v3312_v3 }
  0x21   :  { %v3295_v11 = vld [vmem:[#allocation5 + $0xc0] sm:$0xf]  ;;  %v3696_v12 = vor.u32 %v4751_v10, %v3695_v9  ;;  %v4651_v13 = vld [vmem:[#allocation5 + $0xcc] sm:$0xf0]  ;;  %1333 = vmatpush.bf16.msra.mxu1 %v3440_v7 }
  0x22   :  { %v3423_v14 = vld [vmem:[#allocation5 + $0x1c0] sm:$0xf]  ;;  %v4683_v15 = vld [vmem:[#allocation5 + $0x1cc] sm:$0xf0]  ;;  %1347 = vmatpush.bf16.msra.mxu2 %v3568_v8  ;;  %v3296_v16 = vor.u32 %v4651_v13, %v3295_v11 }
  0x23   :  { %v3424_v17 = vor.u32 %v4683_v15, %v3423_v14  ;;  %v3551_v18 = vld [vmem:[#allocation5 + $0x2c0] sm:$0xf]  ;;  %v4715_v19 = vld [vmem:[#allocation5 + $0x2cc] sm:$0xf0]  ;;  %1361 = vmatpush.bf16.msra.mxu3 %v3696_v12 }
  0x24   :  { %v3679_v20 = vld [vmem:[#allocation5 + $0x3c0] sm:$0xf]  ;;  %v3552_v21 = vor.u32 %v4715_v19, %v3551_v18  ;;  %v4747_v22 = vld [vmem:[#allocation5 + $0x3cc] sm:$0xf0]  ;;  %1320 = vmatpush.bf16.msra.mxu0 %v3296_v16 }
  0x25   :  { %v3279_v23 = vld [vmem:[#allocation5 + $0xa0] sm:$0xf]  ;;  %v4647_v24 = vld [vmem:[#allocation5 + $0xac] sm:$0xf0]  ;;  %v3680_v25 = vor.u32 %v4747_v22, %v3679_v20  ;;  %1334 = vmatpush.bf16.msra.mxu1 %v3424_v17 }
  0x26   :  { %v3407_v26 = vld [vmem:[#allocation5 + $0x1a0] sm:$0xf]  ;;  %v4679_v27 = vld [vmem:[#allocation5 + $0x1ac] sm:$0xf0]  ;;  %v3280_v29 = vor.u32 %v4647_v24, %v3279_v23  ;;  %1348 = vmatpush.bf16.msra.mxu2 %v3552_v21 }
  0x27   :  { %v3535_v28 = vld [vmem:[#allocation5 + $0x2a0] sm:$0xf]  ;;  %v4711_v30 = vld [vmem:[#allocation5 + $0x2ac] sm:$0xf0]  ;;  %v3408_v33 = vor.u32 %v4679_v27, %v3407_v26  ;;  %1362 = vmatpush.bf16.msra.mxu3 %v3680_v25 }
  0x28   :  { %v3663_v31 = vld [vmem:[#allocation5 + $0x3a0] sm:$0xf]  ;;  %v4743_v32 = vld [vmem:[#allocation5 + $0x3ac] sm:$0xf0]  ;;  %v3536_v34 = vor.u32 %v4711_v30, %v3535_v28  ;;  %1321 = vmatpush.bf16.msra.mxu0 %v3280_v29 }
  0x29   :  { %v3263_v35 = vld [vmem:[#allocation5 + $0x80] sm:$0xf]  ;;  %v4643_v36 = vld [vmem:[#allocation5 + $0x8c] sm:$0xf0]  ;;  %v3664_v38 = vor.u32 %v4743_v32, %v3663_v31  ;;  %1335 = vmatpush.bf16.msra.mxu1 %v3408_v33  ;;  %v4653_v32 = vld [vmem:[#allocation5 + $0xe4] sm:$0xf] }
  0x2a   :  { %v3391_v37 = vld [vmem:[#allocation5 + $0x180] sm:$0xf]  ;;  %v4675_v39 = vld [vmem:[#allocation5 + $0x18c] sm:$0xf0]  ;;  %v3264_v44 = vor.u32 %v4643_v36, %v3263_v35  ;;  %1349 = vmatpush.bf16.msra.mxu2 %v3536_v34  ;;  %v3313_v33 = vld [vmem:[#allocation5 + $0xf0] sm:$0xf0] }
  0x2b   :  { %v3519_v40 = vld [vmem:[#allocation5 + $0x280] sm:$0xf]  ;;  %v4707_v41 = vld [vmem:[#allocation5 + $0x28c] sm:$0xf0]  ;;  %v3392_v45 = vor.u32 %v4675_v39, %v3391_v37  ;;  %1363 = vmatpush.bf16.msra.mxu3 %v3664_v38  ;;  %v127_v36 = vld [vmem:[#allocation2 + $0x48] sm:$0xff] }
  0x2c   :  { %v3647_v42 = vld [vmem:[#allocation5 + $0x380] sm:$0xf]  ;;  %v4739_v43 = vld [vmem:[#allocation5 + $0x38c] sm:$0xf0]  ;;  %v3520_v46 = vor.u32 %v4707_v41, %v3519_v40  ;;  %1322 = vmatpush.bf16.msra.mxu0 %v3264_v44  ;;  %v4685_v41 = vld [vmem:[#allocation5 + $0x1e4] sm:$0xf] }
  0x2d   :  { %v3247_v47 = vld [vmem:[#allocation5 + $0x60] sm:$0xf]  ;;  %v4639_v48 = vld [vmem:[#allocation5 + $0x6c] sm:$0xf0]  ;;  %v3648_v50 = vor.u32 %v4739_v43, %v3647_v42  ;;  %1336 = vmatpush.bf16.msra.mxu1 %v3392_v45  ;;  %v125_v43 = vld [vmem:[#allocation2 + $0x38] sm:$0xff] }
  0x2e   :  { %v3375_v49 = vld [vmem:[#allocation5 + $0x160] sm:$0xf]  ;;  %v4671_v51 = vld [vmem:[#allocation5 + $0x16c] sm:$0xf0]  ;;  %v3248_v56 = vor.u32 %v4639_v48, %v3247_v47  ;;  %1350 = vmatpush.bf16.msra.mxu2 %v3520_v46  ;;  %v3441_v46 = vld [vmem:[#allocation5 + $0x1f0] sm:$0xf0] }
  0x2f   :  { %v3503_v52 = vld [vmem:[#allocation5 + $0x260] sm:$0xf]  ;;  %v4703_v53 = vld [vmem:[#allocation5 + $0x26c] sm:$0xf0]  ;;  %v3376_v57 = vor.u32 %v4671_v51, %v3375_v49  ;;  %1364 = vmatpush.bf16.msra.mxu3 %v3648_v50  ;;  %v121_v47 = vld [vmem:[#allocation2 + $0x18] sm:$0xff]  ;;  %v3316_v50 = vor.u32 %v4653_v32, %v3313_v33 }
  0x30   :  { %v3631_v54 = vld [vmem:[#allocation5 + $0x360] sm:$0xf]  ;;  %v4735_v55 = vld [vmem:[#allocation5 + $0x36c] sm:$0xf0]  ;;  %v3504_v58 = vor.u32 %v4703_v53, %v3503_v52  ;;  %1323 = vmatpush.bf16.msra.mxu0 %v3248_v56  ;;  %v4649_v56 = vld [vmem:[#allocation5 + $0xc4] sm:$0xf] }
  0x31   :  { %v3231_v59 = vld [vmem:[#allocation5 + $0x40] sm:$0xf]  ;;  %v4635_v60 = vld [vmem:[#allocation5 + $0x4c] sm:$0xf0]  ;;  %v3632_v62 = vor.u32 %v4735_v55, %v3631_v54  ;;  %1337 = vmatpush.bf16.msra.mxu1 %v3376_v57  ;;  %v3297_v57 = vld [vmem:[#allocation5 + $0xd0] sm:$0xf0] }
  0x32   :  { %v3359_v61 = vld [vmem:[#allocation5 + $0x140] sm:$0xf]  ;;  %v4667_v63 = vld [vmem:[#allocation5 + $0x14c] sm:$0xf0]  ;;  %v3232_v4 = vor.u32 %v4635_v60, %v3231_v59  ;;  %1351 = vmatpush.bf16.msra.mxu2 %v3504_v58 }
  0x33   :  { %v3487_v0 = vld [vmem:[#allocation5 + $0x240] sm:$0xf]  ;;  %v4699_v1 = vld [vmem:[#allocation5 + $0x24c] sm:$0xf0]  ;;  %v3360_v6 = vor.u32 %v4667_v63, %v3359_v61  ;;  %1365 = vmatpush.bf16.msra.mxu3 %v3632_v62  ;;  %v119_v61 = vld [vmem:[#allocation2 + $0x8] sm:$0xff]  ;;  %v3444_v63 = vor.u32 %v4685_v41, %v3441_v46 }
  0x34   :  { %v3615_v2 = vld [vmem:[#allocation5 + $0x340] sm:$0xf]  ;;  %v4731_v3 = vld [vmem:[#allocation5 + $0x34c] sm:$0xf0]  ;;  %v3488_v7 = vor.u32 %v4699_v1, %v3487_v0  ;;  %1324 = vmatpush.bf16.msra.mxu0 %v3232_v4  ;;  %v4681_v1 = vld [vmem:[#allocation5 + $0x1c4] sm:$0xf]  ;;  %v3300_v4 = vor.u32 %v4649_v56, %v3297_v57 }
  0x35   :  { %v3215_v5 = vld [vmem:[#allocation5 + $0x20] sm:$0xf]  ;;  %v4631_v8 = vld [vmem:[#allocation5 + $0x2c] sm:$0xf0]  ;;  %v3616_v11 = vor.u32 %v4731_v3, %v3615_v2  ;;  %1338 = vmatpush.bf16.msra.mxu1 %v3360_v6  ;;  %v3425_v2 = vld [vmem:[#allocation5 + $0x1d0] sm:$0xf0] }
  0x36   :  { %v3343_v9 = vld [vmem:[#allocation5 + $0x120] sm:$0xf]  ;;  %v4663_v10 = vld [vmem:[#allocation5 + $0x12c] sm:$0xf0]  ;;  %v3216_v18 = vor.u32 %v4631_v8, %v3215_v5  ;;  %1352 = vmatpush.bf16.msra.mxu2 %v3488_v7  ;;  %v3377_v41 = vld [vmem:[#allocation5 + $0x170] sm:$0xf0] }
  0x37   :  { %v3471_v12 = vld [vmem:[#allocation5 + $0x220] sm:$0xf]  ;;  %v4695_v13 = vld [vmem:[#allocation5 + $0x22c] sm:$0xf0]  ;;  %v3344_v23 = vor.u32 %v4663_v10, %v3343_v9  ;;  %1366 = vmatpush.bf16.msra.mxu3 %v3616_v11  ;;  %v4645_v10 = vld [vmem:[#allocation5 + $0xa4] sm:$0xf] }
  0x38   :  { %v3599_v14 = vld [vmem:[#allocation5 + $0x320] sm:$0xf]  ;;  %v4727_v15 = vld [vmem:[#allocation5 + $0x32c] sm:$0xf0]  ;;  %v3472_v24 = vor.u32 %v4695_v13, %v3471_v12  ;;  %1325 = vmatpush.bf16.msra.mxu0 %v3216_v18  ;;  %v3281_v11 = vld [vmem:[#allocation5 + $0xb0] sm:$0xf0]  ;;  %v3428_v12 = vor.u32 %v4681_v1, %v3425_v2 }
  0x39   :  { %v3199_v16 = vld [vmem:[#allocation5] sm:$0xf]  ;;  %v4627_v17 = vld [vmem:[#allocation5 + $0xc] sm:$0xf0]  ;;  %v3600_v28 = vor.u32 %v4727_v15, %v3599_v14  ;;  %1339 = vmatpush.bf16.msra.mxu1 %v3344_v23  ;;  %v4677_v14 = vld [vmem:[#allocation5 + $0x1a4] sm:$0xf] }
  0x3a   :  { %v3327_v19 = vld [vmem:[#allocation5 + $0x100] sm:$0xf]  ;;  %v4659_v20 = vld [vmem:[#allocation5 + $0x10c] sm:$0xf0]  ;;  %v3200_v35 = vor.u32 %v4627_v17, %v3199_v16  ;;  %1353 = vmatpush.bf16.msra.mxu2 %v3472_v24  ;;  %v3409_v15 = vld [vmem:[#allocation5 + $0x1b0] sm:$0xf0]  ;;  %v3284_v17 = vor.u32 %v4645_v10, %v3281_v11 }
  0x3b   :  { %v3455_v21 = vld [vmem:[#allocation5 + $0x200] sm:$0xf]  ;;  %v4691_v22 = vld [vmem:[#allocation5 + $0x20c] sm:$0xf0]  ;;  %v3328_v39 = vor.u32 %v4659_v20, %v3327_v19  ;;  %1367 = vmatpush.bf16.msra.mxu3 %v3600_v28  ;;  %v3265_v23 = vld [vmem:[#allocation5 + $0x90] sm:$0xf0]  ;;  %v3412_v24 = vor.u32 %v4677_v14, %v3409_v15 }
  0x3c   :  { %v3583_v25 = vld [vmem:[#allocation5 + $0x300] sm:$0xf]  ;;  %v4723_v26 = vld [vmem:[#allocation5 + $0x30c] sm:$0xf0]  ;;  %v3456_v40 = vor.u32 %v4691_v22, %v3455_v21  ;;  %1326 = vmatpush.bf16.msra.mxu0 %v3200_v35  ;;  %v4641_v22 = vld [vmem:[#allocation5 + $0x84] sm:$0xf] }
  0x3d   :  { %v3823_v27 = vld [vmem:[#allocation5 + $0x4e0] sm:$0xf]  ;;  %v4783_v29 = vld [vmem:[#allocation5 + $0x4ec] sm:$0xf0]  ;;  %v3584_v44 = vor.u32 %v4723_v26, %v3583_v25  ;;  %1340 = vmatpush.bf16.msra.mxu1 %v3328_v39  ;;  %v4673_v26 = vld [vmem:[#allocation5 + $0x184] sm:$0xf] }
  0x3e   :  { %v3951_v30 = vld [vmem:[#allocation5 + $0x5e0] sm:$0xf]  ;;  %v4815_v31 = vld [vmem:[#allocation5 + $0x5ec] sm:$0xf0]  ;;  %v3824_v45 = vor.u32 %v4783_v29, %v3823_v27  ;;  %1354 = vmatpush.bf16.msra.mxu2 %v3456_v40  ;;  %v3393_v27 = vld [vmem:[#allocation5 + $0x190] sm:$0xf0]  ;;  %v3268_v29 = vor.u32 %v4641_v22, %v3265_v23 }
  0x3f   :  { %v120_v34 = vld [vmem:[#allocation2 + $0x10] sm:$0xff]  ;;  %v4819_v38 = vld [vmem:[#allocation5 + $0x60c] sm:$0xf0]  ;;  %v3952_v49 = vor.u32 %v4815_v31, %v3951_v30  ;;  %1368 = vmatpush.bf16.msra.mxu3 %v3584_v44  ;;  %v3249_v35 = vld [vmem:[#allocation5 + $0x70] sm:$0xf0] }
  0x40   :  { %v3967_v37 = vld [vmem:[#allocation5 + $0x600] sm:$0xf]  ;;  %v118_v42 = vld [vmem:[#allocation2] sm:$0xff]  ;;  %v5260_v54 = vpack.c.bf16 %v127_v36, %v120_v34  ;;  %1375 = vmatpush.bf16.msrb.mxu0 %v3824_v45  ;;  %v4637_v34 = vld [vmem:[#allocation5 + $0x64] sm:$0xf] }
  0x41   :  { %v128_v48 = vld [vmem:[#allocation2 + $0x50] sm:$0xff]  ;;  %v4779_v52 = vld [vmem:[#allocation5 + $0x4cc] sm:$0xf0]  ;;  %v5262_v58 = vpack.c.bf16 %v125_v43, %v118_v42  ;;  %v3968_v59 = vor.u32 %v4819_v38, %v3967_v37  ;;  %1389 = vmatpush.bf16.msrb.mxu1 %v3952_v49  ;;  %v131_v37 = vld [vmem:[#allocation2 + $0x68] sm:$0xff]  ;;  %v3396_v38 = vor.u32 %v4673_v26, %v3393_v27  ;;  %v3252_v43 = vor.u32 %v4637_v34, %v3249_v35 }
  0x42   :  { %v3807_v51 = vld [vmem:[#allocation5 + $0x4c0] sm:$0xf]  ;;  %v4811_v55 = vld [vmem:[#allocation5 + $0x5cc] sm:$0xf0]  ;;  %v5264_v60 = vpack.c.bf16 %v128_v48, %v121_v47  ;;  %1355 = vmatmul.bf16.vlgmr.msra.gmra.mxu2 %v5260_v54  ;;  %v4669_v40 = vld [vmem:[#allocation5 + $0x164] sm:$0xf] }
  0x43   :  { %v3935_v53 = vld [vmem:[#allocation5 + $0x5c0] sm:$0xf]  ;;  %v126_v62 = vld [vmem:[#allocation2 + $0x40] sm:$0xff]  ;;  %v3808_v0 = vor.u32 %v4779_v52, %v3807_v51  ;;  %1417 = vmatpush.bf16.msrb.mxu3 %v3316_v50  ;;  %1327 = vmatmul.bf16.vlgmr.msra.gmra.mxu0 %v5262_v58  ;;  %v4633_v48 = vld [vmem:[#allocation5 + $0x44] sm:$0xf]  ;;  %v3380_v51 = vor.u32 %v4669_v40, %v3377_v41 }
  0x44   :  { %v3936_v3 = vor.u32 %v4811_v55, %v3935_v53  ;;  %v3791_v5 = vld [vmem:[#allocation5 + $0x4a0] sm:$0xf]  ;;  %v4775_v6 = vld [vmem:[#allocation5 + $0x4ac] sm:$0xf0]  ;;  %v5268_v8 = vpack.c.bf16 %v126_v62, %v119_v61  ;;  %1410 = vmatpush.bf16.msrb.mxu2 %v3968_v59  ;;  %1369 = vmatmul.bf16.vlgmr.msra.gmra.mxu3 %v5264_v60  ;;  %v3233_v49 = vld [vmem:[#allocation5 + $0x50] sm:$0xf0] }
  0x45   :  { %v3919_v7 = vld [vmem:[#allocation5 + $0x5a0] sm:$0xf]  ;;  %v4807_v9 = vld [vmem:[#allocation5 + $0x5ac] sm:$0xf0]  ;;  %1376 = vmatpush.bf16.msrb.mxu0 %v3808_v0  ;;  %v3792_v13 = vor.u32 %v4775_v6, %v3791_v5  ;;  %v4665_v53 = vld [vmem:[#allocation5 + $0x144] sm:$0xf]  ;;  %v3236_v57 = vor.u32 %v4633_v48, %v3233_v49 }
  0x46   :  { %1390 = vmatpush.bf16.msrb.mxu1 %v3936_v3  ;;  %v3920_v16 = vor.u32 %v4807_v9, %v3919_v7  ;;  %v3775_v18 = vld [vmem:[#allocation5 + $0x480] sm:$0xf]  ;;  %v4771_v19 = vld [vmem:[#allocation5 + $0x48c] sm:$0xf0]  ;;  %v3361_v55 = vld [vmem:[#allocation5 + $0x150] sm:$0xf0] }
  0x47   :  { %1418 = vmatpush.bf16.msrb.mxu3 %v3300_v4  ;;  %v3903_v20 = vld [vmem:[#allocation5 + $0x580] sm:$0xf]  ;;  %1341 = vmatmul.bf16.vlgmr.msra.gmra.mxu1 %v5268_v8  ;;  %v4803_v21 = vld [vmem:[#allocation5 + $0x58c] sm:$0xf0]  ;;  %v3776_v25 = vor.u32 %v4771_v19, %v3775_v18  ;;  %v4629_v0 = vld [vmem:[#allocation5 + $0x24] sm:$0xf]  ;;  %v3364_v4 = vor.u32 %v4665_v53, %v3361_v55 }
  0x48   :  { %1431 = vmatpush.bf16.msra.mxu2 %v3444_v63  ;;  %v3904_v28 = vor.u32 %v4803_v21, %v3903_v20  ;;  %v3759_v30 = vld [vmem:[#allocation5 + $0x460] sm:$0xf]  ;;  %v4767_v31 = vld [vmem:[#allocation5 + $0x46c] sm:$0xf0]  ;;  %v3217_v1 = vld [vmem:[#allocation5 + $0x30] sm:$0xf0] }
  0x49   :  { %1377 = vmatpush.bf16.msrb.mxu0 %v3792_v13  ;;  %v3887_v32 = vld [vmem:[#allocation5 + $0x560] sm:$0xf]  ;;  %v4799_v33 = vld [vmem:[#allocation5 + $0x56c] sm:$0xf0]  ;;  %v3760_v39 = vor.u32 %v4767_v31, %v3759_v30  ;;  %v4661_v2 = vld [vmem:[#allocation5 + $0x124] sm:$0xf]  ;;  %v3220_v11 = vor.u32 %v4629_v0, %v3217_v1 }
  0x4a   :  { %1391 = vmatpush.bf16.msrb.mxu1 %v3920_v16  ;;  %v124_v36 = vld [vmem:[#allocation2 + $0x30] sm:$0xff]  ;;  %v3888_v42 = vor.u32 %v4799_v33, %v3887_v32  ;;  %v4763_v45 = vld [vmem:[#allocation5 + $0x44c] sm:$0xf0]  ;;  %v3345_v3 = vld [vmem:[#allocation5 + $0x130] sm:$0xf0] }
  0x4b   :  { %1419 = vmatpush.bf16.msrb.mxu3 %v3284_v17  ;;  %v3743_v44 = vld [vmem:[#allocation5 + $0x440] sm:$0xf]  ;;  %v4795_v47 = vld [vmem:[#allocation5 + $0x54c] sm:$0xf0]  ;;  %v5272_v50 = vpack.c.bf16 %v131_v37, %v124_v36  ;;  %v4625_v13 = vld [vmem:[#allocation5 + $0x4] sm:$0xf]  ;;  %v3348_v21 = vor.u32 %v4661_v2, %v3345_v3 }
  0x4c   :  { %1432 = vmatpush.bf16.msra.mxu2 %v3428_v12  ;;  %v3871_v46 = vld [vmem:[#allocation5 + $0x540] sm:$0xf]  ;;  %v3744_v52 = vor.u32 %v4763_v45, %v3743_v44  ;;  %v4759_v61 = vld [vmem:[#allocation5 + $0x42c] sm:$0xf0]  ;;  %v3201_v14 = vld [vmem:[#allocation5 + $0x10] sm:$0xf0] }
  0x4d   :  { %1378 = vmatpush.bf16.msrb.mxu0 %v3776_v25  ;;  %v3872_v56 = vor.u32 %v4795_v47, %v3871_v46  ;;  %v3727_v59 = vld [vmem:[#allocation5 + $0x420] sm:$0xf]  ;;  %v4791_v63 = vld [vmem:[#allocation5 + $0x52c] sm:$0xf0]  ;;  %v4717_v15 = vld [vmem:[#allocation5 + $0x2e4] sm:$0xf]  ;;  %v3204_v27 = vor.u32 %v4625_v13, %v3201_v14 }
  0x4e   :  { %1392 = vmatpush.bf16.msrb.mxu1 %v3904_v28  ;;  %v3855_v62 = vld [vmem:[#allocation5 + $0x520] sm:$0xf]  ;;  %v3728_v5 = vor.u32 %v4759_v61, %v3727_v59  ;;  %v4755_v7 = vld [vmem:[#allocation5 + $0x40c] sm:$0xf0]  ;;  %v3569_v16 = vld [vmem:[#allocation5 + $0x2f0] sm:$0xf0] }
  0x4f   :  { %1420 = vmatpush.bf16.msrb.mxu3 %v3268_v29  ;;  %v3711_v6 = vld [vmem:[#allocation5 + $0x400] sm:$0xf]  ;;  %v3856_v10 = vor.u32 %v4791_v63, %v3855_v62  ;;  %v4787_v12 = vld [vmem:[#allocation5 + $0x50c] sm:$0xf0]  ;;  %v4749_v17 = vld [vmem:[#allocation5 + $0x3e4] sm:$0xf]  ;;  %v3572_v31 = vor.u32 %v4717_v15, %v3569_v16 }
  0x50   :  { %1433 = vmatpush.bf16.msra.mxu2 %v3412_v24  ;;  %v3839_v9 = vld [vmem:[#allocation5 + $0x500] sm:$0xf]  ;;  %v3697_v18 = vld [vmem:[#allocation5 + $0x3f0] sm:$0xf0]  ;;  %v4781_v19 = vld [vmem:[#allocation5 + $0x4e4] sm:$0xf]  ;;  %v3712_v22 = vor.u32 %v4755_v7, %v3711_v6 }
  0x51   :  { %1379 = vmatpush.bf16.msrb.mxu0 %v3760_v39  ;;  %v3825_v20 = vld [vmem:[#allocation5 + $0x4f0] sm:$0xf0]  ;;  %v129_v24 = vld [vmem:[#allocation2 + $0x58] sm:$0xff]  ;;  %v4657_v25 = vld [vmem:[#allocation5 + $0x104] sm:$0xf]  ;;  %v3840_v26 = vor.u32 %v4787_v12, %v3839_v9  ;;  %v3700_v32 = vor.u32 %v4749_v17, %v3697_v18 }
  0x52   :  { %1393 = vmatpush.bf16.msrb.mxu1 %v3888_v42  ;;  %3981 = vmatmul.msk.bf16.vlgmr.msrb.gmra.mxu2 %vm1315_vm0, %v5272_v50  ;;  %v122_v23 = vld [vmem:[#allocation2 + $0x20] sm:$0xff]  ;;  %v123_v29 = vld [vmem:[#allocation2 + $0x28] sm:$0xff]  ;;  %v4813_v33 = vld [vmem:[#allocation5 + $0x5e4] sm:$0xf]  ;;  %v3828_v36 = vor.u32 %v4781_v19, %v3825_v20 }
  0x53   :  { %1421 = vmatpush.bf16.msrb.mxu3 %v3252_v43  ;;  %v3329_v28 = vld [vmem:[#allocation5 + $0x110] sm:$0xf0]  ;;  %v4713_v35 = vld [vmem:[#allocation5 + $0x2c4] sm:$0xf]  ;;  %v5276_v37 = vpack.c.bf16 %v129_v24, %v122_v23 }
  0x54   :  { %1434 = vmatpush.bf16.msra.mxu2 %v3396_v38  ;;  %v130_v30 = vld [vmem:[#allocation2 + $0x60] sm:$0xff]  ;;  %v4745_v39 = vld [vmem:[#allocation5 + $0x3c4] sm:$0xf]  ;;  %v3332_v41 = vor.u32 %v4657_v25, %v3329_v28 }
  0x55   :  { %1380 = vmatpush.bf16.msrb.mxu0 %v3744_v52  ;;  %v3953_v34 = vld [vmem:[#allocation5 + $0x5f0] sm:$0xf0]  ;;  %v5278_v42 = vpack.c.bf16 %v130_v30, %v123_v29  ;;  %v4777_v43 = vld [vmem:[#allocation5 + $0x4c4] sm:$0xf] }
  0x56   :  { %1394 = vmatpush.bf16.msrb.mxu1 %v3872_v56  ;;  %v3553_v38 = vld [vmem:[#allocation5 + $0x2d0] sm:$0xf0]  ;;  %v3956_v45 = vor.u32 %v4813_v33, %v3953_v34  ;;  %v4809_v48 = vld [vmem:[#allocation5 + $0x5c4] sm:$0xf] }
  0x57   :  { %1422 = vmatpush.bf16.msrb.mxu3 %v3236_v57  ;;  %v3681_v40 = vld [vmem:[#allocation5 + $0x3d0] sm:$0xf0]  ;;  %v3556_v46 = vor.u32 %v4713_v35, %v3553_v38  ;;  %v4741_v55 = vld [vmem:[#allocation5 + $0x3a4] sm:$0xf] }
  0x58   :  { %1435 = vmatpush.bf16.msra.mxu2 %v3380_v51  ;;  %v3809_v44 = vld [vmem:[#allocation5 + $0x4d0] sm:$0xf0]  ;;  %v3684_v47 = vor.u32 %v4745_v39, %v3681_v40  ;;  %v4709_v51 = vld [vmem:[#allocation5 + $0x2a4] sm:$0xf] }
  0x59   :  { %1381 = vmatpush.bf16.msrb.mxu0 %v3728_v5  ;;  %v3937_v49 = vld [vmem:[#allocation5 + $0x5d0] sm:$0xf0]  ;;  %v3812_v52 = vor.u32 %v4777_v43, %v3809_v44  ;;  %v4773_v57 = vld [vmem:[#allocation5 + $0x4a4] sm:$0xf] }
  0x5a   :  { %1395 = vmatpush.bf16.msrb.mxu1 %v3856_v10  ;;  %v3537_v53 = vld [vmem:[#allocation5 + $0x2b0] sm:$0xf0]  ;;  %v3940_v61 = vor.u32 %v4809_v48, %v3937_v49  ;;  %v4805_v0 = vld [vmem:[#allocation5 + $0x5a4] sm:$0xf] }
  0x5b   :  { %1423 = vmatpush.bf16.msrb.mxu3 %v3220_v11  ;;  %v3665_v56 = vld [vmem:[#allocation5 + $0x3b0] sm:$0xf0]  ;;  %v3540_v62 = vor.u32 %v4709_v51, %v3537_v53  ;;  %v4705_v2 = vld [vmem:[#allocation5 + $0x284] sm:$0xf] }
  0x5c   :  { %1436 = vmatpush.bf16.msra.mxu2 %v3364_v4  ;;  %v3793_v59 = vld [vmem:[#allocation5 + $0x4b0] sm:$0xf0]  ;;  %v3668_v63 = vor.u32 %v4741_v55, %v3665_v56  ;;  %v4737_v5 = vld [vmem:[#allocation5 + $0x384] sm:$0xf] }
  0x5d   :  { %1382 = vmatpush.bf16.msrb.mxu0 %v3712_v22  ;;  %v3921_v1 = vld [vmem:[#allocation5 + $0x5b0] sm:$0xf0]  ;;  %v3796_v3 = vor.u32 %v4773_v57, %v3793_v59  ;;  %v4769_v7 = vld [vmem:[#allocation5 + $0x484] sm:$0xf] }
  0x5e   :  { %1396 = vmatpush.bf16.msrb.mxu1 %v3840_v26  ;;  %v3521_v4 = vld [vmem:[#allocation5 + $0x290] sm:$0xf0]  ;;  %v3924_v10 = vor.u32 %v4805_v0, %v3921_v1  ;;  %v4801_v13 = vld [vmem:[#allocation5 + $0x584] sm:$0xf]  ;;  %v3319_v0 = vld [vmem:[#allocation5 + $0xe8] sm:$0xf] }
  0x5f   :  { %1424 = vmatpush.bf16.msrb.mxu3 %v3204_v27  ;;  %v3649_v6 = vld [vmem:[#allocation5 + $0x390] sm:$0xf0]  ;;  %v3524_v11 = vor.u32 %v4705_v2, %v3521_v4  ;;  %v4701_v15 = vld [vmem:[#allocation5 + $0x264] sm:$0xf]  ;;  %v4656_v1 = vld [vmem:[#allocation5 + $0xf4] sm:$0xf0] }
  0x60   :  { %1437 = vmatpush.bf16.msra.mxu2 %v3348_v21  ;;  %1383 = vmatmul.bf16.vlgmr.msrb.gmra.mxu0 %v5276_v37  ;;  %v3777_v9 = vld [vmem:[#allocation5 + $0x490] sm:$0xf0]  ;;  %v3652_v12 = vor.u32 %v4737_v5, %v3649_v6  ;;  %v4733_v18 = vld [vmem:[#allocation5 + $0x364] sm:$0xf]  ;;  %v3575_v5 = vld [vmem:[#allocation5 + $0x2e8] sm:$0xf] }
  0x61   :  { %1445 = vmatpush.bf16.msra.mxu0 %v3572_v31  ;;  %1397 = vmatmul.bf16.vlgmr.msrb.gmra.mxu1 %v5278_v42  ;;  %v3905_v14 = vld [vmem:[#allocation5 + $0x590] sm:$0xf0]  ;;  %v3780_v16 = vor.u32 %v4769_v7, %v3777_v9  ;;  %v4765_v20 = vld [vmem:[#allocation5 + $0x464] sm:$0xf]  ;;  %v4720_v6 = vld [vmem:[#allocation5 + $0x2f4] sm:$0xf0] }
  0x62   :  { %1459 = vmatpush.bf16.msra.mxu1 %v3700_v32  ;;  %1425 = vmatmul.bf16.vlgmr.msrb.gmra.mxu3 %v5262_v58  ;;  %v3505_v17 = vld [vmem:[#allocation5 + $0x270] sm:$0xf0]  ;;  %v3908_v22 = vor.u32 %v4801_v13, %v3905_v14  ;;  %v4797_v25 = vld [vmem:[#allocation5 + $0x564] sm:$0xf]  ;;  %v3320_v13 = vor.u32 %v4656_v1, %v3319_v0  ;;  %v3703_v14 = vld [vmem:[#allocation5 + $0x3e8] sm:$0xf] }
  0x63   :  { %1473 = vmatpush.bf16.msra.mxu3 %v3828_v36  ;;  %v3633_v19 = vld [vmem:[#allocation5 + $0x370] sm:$0xf0]  ;;  %v3508_v23 = vor.u32 %v4701_v15, %v3505_v17  ;;  %v4697_v27 = vld [vmem:[#allocation5 + $0x244] sm:$0xf]  ;;  %v4752_v15 = vld [vmem:[#allocation5 + $0x3f4] sm:$0xf0] }
  0x64   :  { %1438 = vmatpush.bf16.msra.mxu2 %v3332_v41  ;;  %v3761_v21 = vld [vmem:[#allocation5 + $0x470] sm:$0xf0]  ;;  %v3636_v24 = vor.u32 %v4733_v18, %v3633_v19  ;;  %v4729_v30 = vld [vmem:[#allocation5 + $0x344] sm:$0xf]  ;;  %v3447_v17 = vld [vmem:[#allocation5 + $0x1e8] sm:$0xf]  ;;  %v3576_v19 = vor.u32 %v4720_v6, %v3575_v5 }
  0x65   :  { %1446 = vmatpush.bf16.msra.mxu0 %v3556_v46  ;;  %v3889_v26 = vld [vmem:[#allocation5 + $0x570] sm:$0xf0]  ;;  %v3764_v28 = vor.u32 %v4765_v20, %v3761_v21  ;;  %v4761_v32 = vld [vmem:[#allocation5 + $0x444] sm:$0xf]  ;;  %v4688_v18 = vld [vmem:[#allocation5 + $0x1f4] sm:$0xf0] }
  0x66   :  { %1460 = vmatpush.bf16.msra.mxu1 %v3684_v47  ;;  %v3489_v29 = vld [vmem:[#allocation5 + $0x250] sm:$0xf0]  ;;  %v3892_v34 = vor.u32 %v4797_v25, %v3889_v26  ;;  %v4793_v38 = vld [vmem:[#allocation5 + $0x544] sm:$0xf]  ;;  %v3303_v21 = vld [vmem:[#allocation5 + $0xc8] sm:$0xf]  ;;  %v3448_v26 = vor.u32 %v4688_v18, %v3447_v17 }
  0x67   :  { %1474 = vmatpush.bf16.msra.mxu3 %v3812_v52  ;;  %1439 = vmatmul.bf16.vlgmr.msra.gmra.mxu2 %v5268_v8  ;;  %v3617_v31 = vld [vmem:[#allocation5 + $0x350] sm:$0xf0]  ;;  %v3492_v35 = vor.u32 %v4697_v27, %v3489_v29  ;;  %v4693_v40 = vld [vmem:[#allocation5 + $0x224] sm:$0xf]  ;;  %v4716_v25 = vld [vmem:[#allocation5 + $0x2d4] sm:$0xf0] }
  0x68   :  { %1487 = vmatpush.bf16.msrb.mxu2 %v3956_v45  ;;  %v3745_v33 = vld [vmem:[#allocation5 + $0x450] sm:$0xf0]  ;;  %v3620_v36 = vor.u32 %v4729_v30, %v3617_v31  ;;  %v4725_v44 = vld [vmem:[#allocation5 + $0x324] sm:$0xf]  ;;  %v3687_v27 = vld [vmem:[#allocation5 + $0x3c8] sm:$0xf] }
  0x69   :  { %1447 = vmatpush.bf16.msra.mxu0 %v3540_v62  ;;  %v3873_v39 = vld [vmem:[#allocation5 + $0x550] sm:$0xf0]  ;;  %v3748_v41 = vor.u32 %v4761_v32, %v3745_v33  ;;  %v4757_v46 = vld [vmem:[#allocation5 + $0x424] sm:$0xf]  ;;  %v3431_v30 = vld [vmem:[#allocation5 + $0x1c8] sm:$0xf] }
  0x6a   :  { %1461 = vmatpush.bf16.msra.mxu1 %v3668_v63  ;;  %v3473_v43 = vld [vmem:[#allocation5 + $0x230] sm:$0xf0]  ;;  %v3876_v48 = vor.u32 %v4793_v38, %v3873_v39  ;;  %v4789_v49 = vld [vmem:[#allocation5 + $0x524] sm:$0xf]  ;;  %v4684_v31 = vld [vmem:[#allocation5 + $0x1d4] sm:$0xf0] }
  0x6b   :  { %1475 = vmatpush.bf16.msra.mxu3 %v3796_v3  ;;  %v3601_v45 = vld [vmem:[#allocation5 + $0x330] sm:$0xf0]  ;;  %v3476_v52 = vor.u32 %v4693_v40, %v3473_v43  ;;  %v4689_v55 = vld [vmem:[#allocation5 + $0x204] sm:$0xf]  ;;  %v3287_v33 = vld [vmem:[#allocation5 + $0xa8] sm:$0xf]  ;;  %v3432_v39 = vor.u32 %v4684_v31, %v3431_v30 }
  0x6c   :  { %1488 = vmatpush.bf16.msrb.mxu2 %v3940_v61  ;;  %v3729_v47 = vld [vmem:[#allocation5 + $0x430] sm:$0xf0]  ;;  %v3604_v53 = vor.u32 %v4725_v44, %v3601_v45  ;;  %v4721_v57 = vld [vmem:[#allocation5 + $0x304] sm:$0xf]  ;;  %v4712_v38 = vld [vmem:[#allocation5 + $0x2b4] sm:$0xf0] }
  0x6d   :  { %1448 = vmatpush.bf16.msra.mxu0 %v3524_v11  ;;  %v3857_v51 = vld [vmem:[#allocation5 + $0x530] sm:$0xf0]  ;;  %v3732_v59 = vor.u32 %v4757_v46, %v3729_v47  ;;  %v4753_v62 = vld [vmem:[#allocation5 + $0x404] sm:$0xf]  ;;  %v3671_v40 = vld [vmem:[#allocation5 + $0x3a8] sm:$0xf] }
  0x6e   :  { %1462 = vmatpush.bf16.msra.mxu1 %v3652_v12  ;;  %v3457_v56 = vld [vmem:[#allocation5 + $0x210] sm:$0xf0]  ;;  %v4817_v2 = vld [vmem:[#allocation5 + $0x604] sm:$0xf]  ;;  %v3860_v3 = vor.u32 %v4789_v49, %v3857_v51  ;;  %v3415_v44 = vld [vmem:[#allocation5 + $0x1a8] sm:$0xf] }
  0x6f   :  { %1476 = vmatpush.bf16.msra.mxu3 %v3780_v16  ;;  %v3585_v61 = vld [vmem:[#allocation5 + $0x310] sm:$0xf0]  ;;  %v3460_v7 = vor.u32 %v4689_v55, %v3457_v56  ;;  %v4680_v45 = vld [vmem:[#allocation5 + $0x1b4] sm:$0xf0]  ;;  %v3271_v47 = vld [vmem:[#allocation5 + $0x88] sm:$0xf] }
  0x70   :  { %1489 = vmatpush.bf16.msrb.mxu2 %v3924_v10  ;;  %v3713_v63 = vld [vmem:[#allocation5 + $0x410] sm:$0xf0]  ;;  %v3588_v9 = vor.u32 %v4721_v57, %v3585_v61  ;;  %v4785_v10 = vld [vmem:[#allocation5 + $0x504] sm:$0xf]  ;;  %v3527_v51 = vld [vmem:[#allocation5 + $0x288] sm:$0xf] }
  0x71   :  { %1449 = vmatpush.bf16.msra.mxu0 %v3508_v23  ;;  %v3969_v4 = vld [vmem:[#allocation5 + $0x610] sm:$0xf0]  ;;  %v3716_v12 = vor.u32 %v4753_v62, %v3713_v63  ;;  %v3704_v23 = vor.u32 %v4752_v15, %v3703_v14  ;;  %v3655_v55 = vld [vmem:[#allocation5 + $0x388] sm:$0xf]  ;;  %v4740_v56 = vld [vmem:[#allocation5 + $0x394] sm:$0xf0] }
  0x72   :  { %1463 = vmatpush.bf16.msra.mxu1 %v3636_v24  ;;  %v3841_v11 = vld [vmem:[#allocation5 + $0x510] sm:$0xf0]  ;;  %v3972_v16 = vor.u32 %v4817_v2, %v3969_v4  ;;  %v3559_v24 = vld [vmem:[#allocation5 + $0x2c8] sm:$0xf]  ;;  %v4676_v61 = vld [vmem:[#allocation5 + $0x194] sm:$0xf0]  ;;  %v3656_v1 = vor.u32 %v4740_v56, %v3655_v55 }
  0x73   :  { %1477 = vmatpush.bf16.msra.mxu3 %v3764_v28  ;;  %v3844_v20 = vor.u32 %v4785_v10, %v3841_v11  ;;  %v4748_v28 = vld [vmem:[#allocation5 + $0x3d4] sm:$0xf0]  ;;  %v3560_v32 = vor.u32 %v4716_v25, %v3559_v24  ;;  %v3255_v63 = vld [vmem:[#allocation5 + $0x68] sm:$0xf]  ;;  %v4654_v55 = vld [vmem:[#allocation5 + $0xec] sm:$0xf] }
  0x74   :  { %1490 = vmatpush.bf16.msrb.mxu2 %v3908_v22  ;;  %v4652_v22 = vld [vmem:[#allocation5 + $0xd4] sm:$0xf0]  ;;  %v3511_v2 = vld [vmem:[#allocation5 + $0x268] sm:$0xf]  ;;  %v3321_v56 = vld [vmem:[#allocation5 + $0xf8] sm:$0xf0] }
  0x75   :  { %1450 = vmatpush.bf16.msra.mxu0 %v3492_v35  ;;  %v3304_v29 = vor.u32 %v4652_v22, %v3303_v21  ;;  %v3688_v35 = vor.u32 %v4748_v28, %v3687_v27  ;;  %v4640_v0 = vld [vmem:[#allocation5 + $0x74] sm:$0xf0]  ;;  %v3639_v5 = vld [vmem:[#allocation5 + $0x368] sm:$0xf] }
  0x76   :  { %1464 = vmatpush.bf16.msra.mxu1 %v3620_v36  ;;  %v3543_v36 = vld [vmem:[#allocation5 + $0x2a8] sm:$0xf]  ;;  %v4736_v6 = vld [vmem:[#allocation5 + $0x374] sm:$0xf0] }
  0x77   :  { %1478 = vmatpush.bf16.msra.mxu3 %v3748_v41  ;;  %v4744_v41 = vld [vmem:[#allocation5 + $0x3b4] sm:$0xf0]  ;;  %v3544_v46 = vor.u32 %v4712_v38, %v3543_v36  ;;  %v3640_v14 = vor.u32 %v4736_v6, %v3639_v5  ;;  %v3495_v15 = vld [vmem:[#allocation5 + $0x248] sm:$0xf]  ;;  %v3324_v6 = vor.u32 %v4654_v55, %v3321_v56 }
  0x78   :  { %1491 = vmatpush.bf16.msrb.mxu2 %v3892_v34  ;;  %v4648_v34 = vld [vmem:[#allocation5 + $0xb4] sm:$0xf0]  ;;  %v3672_v49 = vor.u32 %v4744_v41, %v3671_v40  ;;  %v3623_v18 = vld [vmem:[#allocation5 + $0x348] sm:$0xf] }
  0x79   :  { %1451 = vmatpush.bf16.msra.mxu0 %v3476_v52  ;;  %v3288_v43 = vor.u32 %v4648_v34, %v3287_v33  ;;  %v4708_v52 = vld [vmem:[#allocation5 + $0x294] sm:$0xf0]  ;;  %v3367_v21 = vld [vmem:[#allocation5 + $0x148] sm:$0xf] }
  0x7a   :  { %1465 = vmatpush.bf16.msra.mxu1 %v3604_v53  ;;  %v3416_v53 = vor.u32 %v4680_v45, %v3415_v44  ;;  %v3528_v62 = vor.u32 %v4708_v52, %v3527_v51  ;;  %v4672_v10 = vld [vmem:[#allocation5 + $0x174] sm:$0xf0]  ;;  %v3223_v24 = vld [vmem:[#allocation5 + $0x28] sm:$0xf] }
  0x7b   :  { %1479 = vmatpush.bf16.msra.mxu3 %v3732_v59  ;;  %v3399_v59 = vld [vmem:[#allocation5 + $0x188] sm:$0xf]  ;;  %v4668_v22 = vld [vmem:[#allocation5 + $0x154] sm:$0xf0] }
  0x7c   :  { %1492 = vmatpush.bf16.msrb.mxu2 %v3876_v48  ;;  %v4644_v48 = vld [vmem:[#allocation5 + $0x94] sm:$0xf0]  ;;  %v3400_v4 = vor.u32 %v4676_v61, %v3399_v59  ;;  %v3479_v27 = vld [vmem:[#allocation5 + $0x228] sm:$0xf] }
  0x7d   :  { %1452 = vmatpush.bf16.msra.mxu0 %v3460_v7  ;;  %v3272_v57 = vor.u32 %v4644_v48, %v3271_v47  ;;  %v3256_v7 = vor.u32 %v4640_v0, %v3255_v63  ;;  %v4632_v25 = vld [vmem:[#allocation5 + $0x34] sm:$0xf0]  ;;  %v3607_v30 = vld [vmem:[#allocation5 + $0x328] sm:$0xf] }
  0x7e   :  { %1466 = vmatpush.bf16.msra.mxu1 %v3588_v9  ;;  %v3383_v9 = vld [vmem:[#allocation5 + $0x168] sm:$0xf]  ;;  %v4696_v28 = vld [vmem:[#allocation5 + $0x234] sm:$0xf0] }
  0x7f   :  { %1480 = vmatpush.bf16.msra.mxu3 %v3716_v12  ;;  %v3239_v12 = vld [vmem:[#allocation5 + $0x48] sm:$0xf]  ;;  %v3384_v17 = vor.u32 %v4672_v10, %v3383_v9  ;;  %v4728_v31 = vld [vmem:[#allocation5 + $0x334] sm:$0xf0]  ;;  %v3480_v36 = vor.u32 %v4696_v28, %v3479_v27  ;;  %v4650_v9 = vld [vmem:[#allocation5 + $0xcc] sm:$0xf] }
  0x80   :  { %1493 = vmatpush.bf16.msrb.mxu2 %v3860_v3  ;;  %1453 = vmatmul.bf16.vlgmr.msra.gmra.mxu0 %v5260_v54  ;;  %v4704_v3 = vld [vmem:[#allocation5 + $0x274] sm:$0xf0]  ;;  %v3351_v33 = vld [vmem:[#allocation5 + $0x128] sm:$0xf]  ;;  %v3608_v41 = vor.u32 %v4728_v31, %v3607_v30  ;;  %v3305_v10 = vld [vmem:[#allocation5 + $0xd8] sm:$0xf0] }
  0x81   :  { %1543 = vmatpush.bf16.msrb.mxu0 %v3576_v19  ;;  %1467 = vmatmul.bf16.vlgmr.msra.gmra.mxu1 %v5264_v60  ;;  %v3512_v11 = vor.u32 %v4704_v3, %v3511_v2  ;;  %v4732_v19 = vld [vmem:[#allocation5 + $0x354] sm:$0xf0]  ;;  %v3463_v44 = vld [vmem:[#allocation5 + $0x208] sm:$0xf]  ;;  %v4686_v3 = vld [vmem:[#allocation5 + $0x1ec] sm:$0xf] }
  0x82   :  { %1515 = vmatpush.bf16.msrb.mxu1 %v3320_v13  ;;  %1481 = vmatmul.bf16.vlgmr.msra.gmra.mxu3 %v5276_v37  ;;  %v4636_v13 = vld [vmem:[#allocation5 + $0x54] sm:$0xf0]  ;;  %v3959_v61 = vld [vmem:[#allocation5 + $0x5e8] sm:$0xf]  ;;  %v3417_v30 = vld [vmem:[#allocation5 + $0x1b8] sm:$0xf0] }
  0x83   :  { %1508 = vmatpush.bf16.msrb.mxu3 %v3972_v16  ;;  %v4700_v16 = vld [vmem:[#allocation5 + $0x254] sm:$0xf0]  ;;  %v3815_v63 = vld [vmem:[#allocation5 + $0x4c8] sm:$0xf] }
  0x84   :  { %1494 = vmatpush.bf16.msrb.mxu2 %v3844_v20  ;;  %v3240_v20 = vor.u32 %v4636_v13, %v3239_v12  ;;  %v4664_v34 = vld [vmem:[#allocation5 + $0x134] sm:$0xf0]  ;;  %v3943_v13 = vld [vmem:[#allocation5 + $0x5c8] sm:$0xf] }
  0x85   :  { %1544 = vmatpush.bf16.msrb.mxu0 %v3560_v32  ;;  %v3224_v32 = vor.u32 %v4632_v25, %v3223_v24  ;;  %v4628_v38 = vld [vmem:[#allocation5 + $0x14] sm:$0xf0]  ;;  %v3352_v47 = vor.u32 %v4664_v34, %v3351_v33  ;;  %v3927_v25 = vld [vmem:[#allocation5 + $0x5a8] sm:$0xf]  ;;  %v4642_v33 = vld [vmem:[#allocation5 + $0x8c] sm:$0xf] }
  0x86   :  { %1516 = vmatpush.bf16.msrb.mxu1 %v3304_v29  ;;  %v3368_v29 = vor.u32 %v4668_v22, %v3367_v21  ;;  %v4784_v40 = vld [vmem:[#allocation5 + $0x4f4] sm:$0xf0]  ;;  %v4646_v21 = vld [vmem:[#allocation5 + $0xac] sm:$0xf]  ;;  %v3289_v22 = vld [vmem:[#allocation5 + $0xb8] sm:$0xf0] }
  0x87   :  { %1529 = vmatpush.bf16.msra.mxu3 %v3448_v26  ;;  %1495 = vmatmul.bf16.vlgmr.msrb.gmra.mxu2 %v5278_v42  ;;  %v3624_v26 = vor.u32 %v4732_v19, %v3623_v18  ;;  %v4692_v45 = vld [vmem:[#allocation5 + $0x214] sm:$0xf0]  ;;  %v3433_v18 = vld [vmem:[#allocation5 + $0x1d8] sm:$0xf0]  ;;  %v3308_v19 = vor.u32 %v4650_v9, %v3305_v10  ;;  %v3783_v27 = vld [vmem:[#allocation5 + $0x488] sm:$0xf]  ;;  %v3292_v31 = vor.u32 %v4646_v21, %v3289_v22 }
  0x88   :  { %1557 = vmatpush.bf16.msra.mxu2 %v3704_v23  ;;  %v3496_v23 = vor.u32 %v4700_v16, %v3495_v15  ;;  %v4724_v48 = vld [vmem:[#allocation5 + $0x314] sm:$0xf0]  ;;  %v3464_v59 = vor.u32 %v4692_v45, %v3463_v44  ;;  %v3799_v15 = vld [vmem:[#allocation5 + $0x4a8] sm:$0xf]  ;;  %v3273_v34 = vld [vmem:[#allocation5 + $0x98] sm:$0xf0] }
  0x89   :  { %1545 = vmatpush.bf16.msrb.mxu0 %v3544_v46  ;;  %v3591_v46 = vld [vmem:[#allocation5 + $0x308] sm:$0xf]  ;;  %v4820_v51 = vld [vmem:[#allocation5 + $0x614] sm:$0xf0]  ;;  %v3401_v44 = vld [vmem:[#allocation5 + $0x198] sm:$0xf0]  ;;  %v3276_v45 = vor.u32 %v4642_v33, %v3273_v34 }
  0x8a   :  { %1517 = vmatpush.bf16.msrb.mxu1 %v3288_v43  ;;  %v3335_v43 = vld [vmem:[#allocation5 + $0x108] sm:$0xf]  ;;  %v3592_v0 = vor.u32 %v4724_v48, %v3591_v46  ;;  %v4776_v16 = vld [vmem:[#allocation5 + $0x4b4] sm:$0xf0]  ;;  %v3257_v48 = vld [vmem:[#allocation5 + $0x78] sm:$0xf0] }
  0x8b   :  { %1530 = vmatpush.bf16.msra.mxu3 %v3432_v39  ;;  %v3831_v39 = vld [vmem:[#allocation5 + $0x4e8] sm:$0xf]  ;;  %v4772_v28 = vld [vmem:[#allocation5 + $0x494] sm:$0xf0]  ;;  %v3369_v9 = vld [vmem:[#allocation5 + $0x158] sm:$0xf0] }
  0x8c   :  { %1558 = vmatpush.bf16.msra.mxu2 %v3688_v35  ;;  %v3207_v35 = vld [vmem:[#allocation5 + $0x8] sm:$0xf]  ;;  %v4764_v56 = vld [vmem:[#allocation5 + $0x454] sm:$0xf0]  ;;  %v3353_v21 = vld [vmem:[#allocation5 + $0x138] sm:$0xf0] }
  0x8d   :  { %1546 = vmatpush.bf16.msrb.mxu0 %v3528_v62  ;;  %v3208_v52 = vor.u32 %v4628_v38, %v3207_v35  ;;  %v4816_v62 = vld [vmem:[#allocation5 + $0x5f4] sm:$0xf0]  ;;  %v3784_v35 = vor.u32 %v4772_v28, %v3783_v27  ;;  %v3911_v38 = vld [vmem:[#allocation5 + $0x588] sm:$0xf]  ;;  %v4626_v27 = vld [vmem:[#allocation5 + $0xc] sm:$0xf] }
  0x8e   :  { %1518 = vmatpush.bf16.msrb.mxu1 %v3272_v57  ;;  %v3832_v57 = vor.u32 %v4784_v40, %v3831_v39  ;;  %v4804_v39 = vld [vmem:[#allocation5 + $0x594] sm:$0xf0]  ;;  %v3767_v40 = vld [vmem:[#allocation5 + $0x468] sm:$0xf]  ;;  %v3209_v28 = vld [vmem:[#allocation5 + $0x18] sm:$0xf0] }
  0x8f   :  { %1531 = vmatpush.bf16.msra.mxu3 %v3416_v53  ;;  %v4660_v53 = vld [vmem:[#allocation5 + $0x114] sm:$0xf0]  ;;  %v3912_v46 = vor.u32 %v4804_v39, %v3911_v38  ;;  %v3751_v55 = vld [vmem:[#allocation5 + $0x448] sm:$0xf]  ;;  %v3705_v33 = vld [vmem:[#allocation5 + $0x3f8] sm:$0xf0]  ;;  %v3212_v39 = vor.u32 %v4626_v27, %v3209_v28 }
  0x90   :  { %1559 = vmatpush.bf16.msra.mxu2 %v3672_v49  ;;  %v3975_v49 = vld [vmem:[#allocation5 + $0x608] sm:$0xf]  ;;  %v3336_v5 = vor.u32 %v4660_v53, %v3335_v43  ;;  %v4674_v43 = vld [vmem:[#allocation5 + $0x18c] sm:$0xf]  ;;  %v4800_v53 = vld [vmem:[#allocation5 + $0x574] sm:$0xf0] }
  0x91   :  { %1547 = vmatpush.bf16.msrb.mxu0 %v3512_v11  ;;  %v3976_v2 = vor.u32 %v4820_v51, %v3975_v49  ;;  %v3404_v51 = vor.u32 %v4674_v43, %v3401_v44  ;;  %v4714_v38 = vld [vmem:[#allocation5 + $0x2cc] sm:$0xf]  ;;  %v3337_v43 = vld [vmem:[#allocation5 + $0x118] sm:$0xf0] }
  0x92   :  { %1519 = vmatpush.bf16.msrb.mxu1 %v3256_v7  ;;  %3982 = vmatmul.msk.bf16.vlgmr.msrb.gmra.mxu3 %vm1315_vm0, %v5272_v50  ;;  %v3960_v7 = vor.u32 %v4816_v62, %v3959_v61  ;;  %v3641_v28 = vld [vmem:[#allocation5 + $0x378] sm:$0xf0] }
  0x93   :  { %1532 = vmatpush.bf16.msra.mxu3 %v3400_v4  ;;  %v3449_v4 = vld [vmem:[#allocation5 + $0x1f8] sm:$0xf0] }
  0x94   :  { %1560 = vmatpush.bf16.msra.mxu2 %v3656_v1  ;;  %v4780_v1 = vld [vmem:[#allocation5 + $0x4d4] sm:$0xf0]  ;;  %v3452_v12 = vor.u32 %v4686_v3, %v3449_v4  ;;  %v3879_v3 = vld [vmem:[#allocation5 + $0x548] sm:$0xf] }
  0x95   :  { %1548 = vmatpush.bf16.msrb.mxu0 %v3496_v23  ;;  %v3816_v11 = vor.u32 %v4780_v1, %v3815_v63  ;;  %v3800_v23 = vor.u32 %v4776_v16, %v3799_v15  ;;  %v4634_v63 = vld [vmem:[#allocation5 + $0x4c] sm:$0xf]  ;;  %v3752_v1 = vor.u32 %v4764_v56, %v3751_v55  ;;  %v4796_v4 = vld [vmem:[#allocation5 + $0x554] sm:$0xf0]  ;;  %v3863_v16 = vld [vmem:[#allocation5 + $0x528] sm:$0xf] }
  0x96   :  { %1520 = vmatpush.bf16.msrb.mxu1 %v3240_v20  ;;  %v4778_v55 = vld [vmem:[#allocation5 + $0x4cc] sm:$0xf]  ;;  %v3817_v56 = vld [vmem:[#allocation5 + $0x4d8] sm:$0xf0] }
  0x97   :  { %1533 = vmatpush.bf16.msra.mxu3 %v3384_v17  ;;  %v4682_v17 = vld [vmem:[#allocation5 + $0x1cc] sm:$0xf] }
  0x98   :  { %1561 = vmatpush.bf16.msra.mxu2 %v3640_v14  ;;  %v4812_v14 = vld [vmem:[#allocation5 + $0x5d4] sm:$0xf0]  ;;  %v3436_v24 = vor.u32 %v4682_v17, %v3433_v18  ;;  %v3719_v18 = vld [vmem:[#allocation5 + $0x408] sm:$0xf] }
  0x99   :  { %1549 = vmatpush.bf16.msrb.mxu0 %v3480_v36  ;;  %v3944_v20 = vor.u32 %v4812_v14, %v3943_v13  ;;  %v3225_v13 = vld [vmem:[#allocation5 + $0x38] sm:$0xf0]  ;;  %v4792_v17 = vld [vmem:[#allocation5 + $0x534] sm:$0xf0] }
  0x9a   :  { %1521 = vmatpush.bf16.msrb.mxu1 %v3224_v32 }
  0x9b   :  { %1534 = vmatpush.bf16.msra.mxu3 %v3368_v29  ;;  %v4678_v29 = vld [vmem:[#allocation5 + $0x1ac] sm:$0xf] }
  0x9c   :  { %1562 = vmatpush.bf16.msra.mxu2 %v3624_v26  ;;  %v4808_v26 = vld [vmem:[#allocation5 + $0x5b4] sm:$0xf0]  ;;  %v3420_v36 = vor.u32 %v4678_v29, %v3417_v30 }
  0x9d   :  { %1550 = vmatpush.bf16.msrb.mxu0 %v3464_v59  ;;  %v3928_v32 = vor.u32 %v4808_v26, %v3927_v25  ;;  %v3385_v59 = vld [vmem:[#allocation5 + $0x178] sm:$0xf0]  ;;  %v3864_v25 = vor.u32 %v4792_v17, %v3863_v16  ;;  %v3847_v26 = vld [vmem:[#allocation5 + $0x508] sm:$0xf] }
  0x9e   :  { %1522 = vmatpush.bf16.msrb.mxu1 %v3208_v52  ;;  %v3895_v52 = vld [vmem:[#allocation5 + $0x568] sm:$0xf]  ;;  %v3657_v17 = vld [vmem:[#allocation5 + $0x398] sm:$0xf0] }
  0x9f   :  { %1535 = vmatpush.bf16.msra.mxu3 %v3352_v47  ;;  %v4638_v47 = vld [vmem:[#allocation5 + $0x6c] sm:$0xf]  ;;  %v3896_v62 = vor.u32 %v4800_v53, %v3895_v52  ;;  %v3689_v53 = vld [vmem:[#allocation5 + $0x3d8] sm:$0xf0] }
  0xa0   :  { %1563 = vmatpush.bf16.msra.mxu2 %v3608_v41  ;;  %1551 = vmatmul.bf16.vlgmr.msrb.gmra.mxu0 %v5260_v54  ;;  %v4768_v41 = vld [vmem:[#allocation5 + $0x474] sm:$0xf0]  ;;  %v3260_v61 = vor.u32 %v4638_v47, %v3257_v48 }
  0xa1   :  { %1606 = vmatpush.bf16.msra.mxu0 %v3976_v2  ;;  %1523 = vmatmul.bf16.vlgmr.msrb.gmra.mxu1 %v5262_v58  ;;  %v3768_v49 = vor.u32 %v4768_v41, %v3767_v40  ;;  %v3561_v40 = vld [vmem:[#allocation5 + $0x2d8] sm:$0xf0]  ;;  %v4658_v41 = vld [vmem:[#allocation5 + $0x10c] sm:$0xf] }
  0xa2   :  { %1571 = vmatpush.bf16.msra.mxu1 %v3832_v57  ;;  %v4670_v57 = vld [vmem:[#allocation5 + $0x16c] sm:$0xf]  ;;  %v3340_v52 = vor.u32 %v4658_v41, %v3337_v43  ;;  %v3753_v43 = vld [vmem:[#allocation5 + $0x458] sm:$0xf0] }
  0xa3   :  { %1536 = vmatpush.bf16.msra.mxu3 %v3336_v5  ;;  %v3388_v2 = vor.u32 %v4670_v57, %v3385_v59  ;;  %v3735_v5 = vld [vmem:[#allocation5 + $0x428] sm:$0xf]  ;;  %v4710_v59 = vld [vmem:[#allocation5 + $0x2ac] sm:$0xf] }
  0xa4   :  { %1564 = vmatpush.bf16.msra.mxu2 %v3592_v0  ;;  %v3241_v0 = vld [vmem:[#allocation5 + $0x58] sm:$0xf0]  ;;  %v4762_v41 = vld [vmem:[#allocation5 + $0x44c] sm:$0xf] }
  0xa5   :  { %1627 = vmatpush.bf16.msrb.mxu0 %v3452_v12  ;;  %v3244_v10 = vor.u32 %v4634_v63, %v3241_v0  ;;  %v4630_v12 = vld [vmem:[#allocation5 + $0x2c] sm:$0xf]  ;;  %v3945_v63 = vld [vmem:[#allocation5 + $0x5d8] sm:$0xf0] }
  0xa6   :  { %1572 = vmatpush.bf16.msra.mxu1 %v3816_v11  ;;  %1537 = vmatmul.bf16.vlgmr.msra.gmra.mxu3 %v5268_v8  ;;  %v3880_v11 = vor.u32 %v4796_v4, %v3879_v3  ;;  %v3228_v22 = vor.u32 %v4630_v12, %v3225_v13  ;;  %v3673_v4 = vld [vmem:[#allocation5 + $0x3b8] sm:$0xf0] }
  0xa7   :  { %1585 = vmatpush.bf16.msrb.mxu3 %v3960_v7  ;;  %1565 = vmatmul.bf16.vlgmr.msra.gmra.mxu2 %v5264_v60  ;;  %v4666_v7 = vld [vmem:[#allocation5 + $0x14c] sm:$0xf]  ;;  %v3929_v12 = vld [vmem:[#allocation5 + $0x5b8] sm:$0xf0] }
  0xa8   :  { %1613 = vmatpush.bf16.msrb.mxu2 %v3324_v6  ;;  %v4760_v6 = vld [vmem:[#allocation5 + $0x434] sm:$0xf0]  ;;  %v3372_v15 = vor.u32 %v4666_v7, %v3369_v9  ;;  %v4706_v9 = vld [vmem:[#allocation5 + $0x28c] sm:$0xf] }
  0xa9   :  { %1628 = vmatpush.bf16.msrb.mxu0 %v3436_v24  ;;  %v3736_v14 = vor.u32 %v4760_v6, %v3735_v5  ;;  %v3577_v24 = vld [vmem:[#allocation5 + $0x2f8] sm:$0xf0]  ;;  %v4774_v5 = vld [vmem:[#allocation5 + $0x4ac] sm:$0xf] }
  0xaa   :  { %1573 = vmatpush.bf16.msra.mxu1 %v3800_v23  ;;  %v4718_v23 = vld [vmem:[#allocation5 + $0x2ec] sm:$0xf]  ;;  %v3801_v6 = vld [vmem:[#allocation5 + $0x4b8] sm:$0xf0] }
  0xab   :  { %1586 = vmatpush.bf16.msrb.mxu3 %v3944_v20  ;;  %v4662_v20 = vld [vmem:[#allocation5 + $0x12c] sm:$0xf]  ;;  %v3580_v34 = vor.u32 %v4718_v23, %v3577_v24 }
  0xac   :  { %1614 = vmatpush.bf16.msrb.mxu2 %v3308_v19  ;;  %v4756_v19 = vld [vmem:[#allocation5 + $0x414] sm:$0xf0]  ;;  %v3356_v30 = vor.u32 %v4662_v20, %v3353_v21  ;;  %v4702_v21 = vld [vmem:[#allocation5 + $0x26c] sm:$0xf] }
  0xad   :  { %1629 = vmatpush.bf16.msrb.mxu0 %v3420_v36  ;;  %v3720_v29 = vor.u32 %v4756_v19, %v3719_v18  ;;  %v3833_v36 = vld [vmem:[#allocation5 + $0x4f8] sm:$0xf0]  ;;  %v4770_v18 = vld [vmem:[#allocation5 + $0x48c] sm:$0xf] }
  0xae   :  { %1574 = vmatpush.bf16.msra.mxu1 %v3784_v35  ;;  %v4782_v35 = vld [vmem:[#allocation5 + $0x4ec] sm:$0xf]  ;;  %v3785_v19 = vld [vmem:[#allocation5 + $0x498] sm:$0xf0] }
  0xaf   :  { %1587 = vmatpush.bf16.msrb.mxu3 %v3928_v32  ;;  %v4750_v32 = vld [vmem:[#allocation5 + $0x3ec] sm:$0xf]  ;;  %v3836_v48 = vor.u32 %v4782_v35, %v3833_v36 }
  0xb0   :  { %1615 = vmatpush.bf16.msrb.mxu2 %v3292_v31  ;;  %3983 = vmatmul.msk.bf16.vlgmr.msra.gmra.mxu0 %vm1315_vm0, %v5272_v50  ;;  %v4788_v31 = vld [vmem:[#allocation5 + $0x514] sm:$0xf0]  ;;  %v3708_v47 = vor.u32 %v4750_v32, %v3705_v33  ;;  %v4802_v23 = vld [vmem:[#allocation5 + $0x58c] sm:$0xf] }
  0xb1   :  { %1630 = vmatpush.bf16.msrb.mxu0 %v3404_v51  ;;  %v3848_v44 = vor.u32 %v4788_v31, %v3847_v26  ;;  %v3564_v51 = vor.u32 %v4714_v38, %v3561_v40  ;;  %v4734_v26 = vld [vmem:[#allocation5 + $0x36c] sm:$0xf]  ;;  %v3625_v40 = vld [vmem:[#allocation5 + $0x358] sm:$0xf0] }
  0xb2   :  { %1575 = vmatpush.bf16.msra.mxu1 %v3768_v49  ;;  %v4746_v49 = vld [vmem:[#allocation5 + $0x3cc] sm:$0xf]  ;;  %v3644_v35 = vor.u32 %v4734_v26, %v3641_v28  ;;  %v4211_v26 = vld [vmem:[#allocation8 + $0x1c0] sm:$0xf] }
  0xb3   :  { %1588 = vmatpush.bf16.msrb.mxu3 %v3912_v46  ;;  %v3961_v46 = vld [vmem:[#allocation5 + $0x5f8] sm:$0xf0]  ;;  %v3692_v0 = vor.u32 %v4746_v49, %v3689_v53  ;;  %v4698_v32 = vld [vmem:[#allocation5 + $0x24c] sm:$0xf] }
  0xb4   :  { %1616 = vmatpush.bf16.msrb.mxu2 %v3276_v45  ;;  %v4814_v45 = vld [vmem:[#allocation5 + $0x5ec] sm:$0xf] }
  0xb5   :  { %1631 = vmatpush.bf16.msrb.mxu0 %v3388_v2  ;;  %v3964_v57 = vor.u32 %v4814_v45, %v3961_v46  ;;  %v4742_v2 = vld [vmem:[#allocation5 + $0x3ac] sm:$0xf]  ;;  %v3481_v46 = vld [vmem:[#allocation5 + $0x238] sm:$0xf0] }
  0xb6   :  { %1576 = vmatpush.bf16.msra.mxu1 %v3752_v1  ;;  %v3820_v1 = vor.u32 %v4778_v55, %v3817_v56  ;;  %v3676_v13 = vor.u32 %v4742_v2, %v3673_v4  ;;  %v4798_v33 = vld [vmem:[#allocation5 + $0x56c] sm:$0xf]  ;;  %v3609_v55 = vld [vmem:[#allocation5 + $0x338] sm:$0xf0] }
  0xb7   :  { %1589 = vmatpush.bf16.msrb.mxu3 %v3896_v62  ;;  %v4810_v62 = vld [vmem:[#allocation5 + $0x5cc] sm:$0xf]  ;;  %v3977_v2 = vld [vmem:[#allocation5 + $0x618] sm:$0xf0] }
  0xb8   :  { %1617 = vmatpush.bf16.msrb.mxu2 %v3260_v61  ;;  %v3545_v61 = vld [vmem:[#allocation5 + $0x2b8] sm:$0xf0]  ;;  %v3948_v7 = vor.u32 %v4810_v62, %v3945_v63  ;;  %v4730_v38 = vld [vmem:[#allocation5 + $0x34c] sm:$0xf] }
  0xb9   :  { %1632 = vmatpush.bf16.msrb.mxu0 %v3372_v15  ;;  %v3548_v3 = vor.u32 %v4710_v59, %v3545_v61  ;;  %v4738_v15 = vld [vmem:[#allocation5 + $0x38c] sm:$0xf]  ;;  %v3628_v49 = vor.u32 %v4730_v38, %v3625_v40  ;;  %v3465_v62 = vld [vmem:[#allocation5 + $0x218] sm:$0xf0]  ;;  %v4179_v38 = vld [vmem:[#allocation8 + $0x180] sm:$0xf] }
  0xba   :  { %1577 = vmatpush.bf16.msra.mxu1 %v3736_v14  ;;  %v3804_v14 = vor.u32 %v4774_v5, %v3801_v6  ;;  %v3660_v24 = vor.u32 %v4738_v15, %v3657_v17  ;;  %v4694_v45 = vld [vmem:[#allocation5 + $0x22c] sm:$0xf]  ;;  %v4851_v15 = vld [vmem:[#allocation8 + $0xec] sm:$0xf0]  ;;  %v4227_v17 = vld [vmem:[#allocation8 + $0x1e0] sm:$0xf] }
  0xbb   :  { %1590 = vmatpush.bf16.msrb.mxu3 %v3880_v11  ;;  %v4806_v11 = vld [vmem:[#allocation5 + $0x5ac] sm:$0xf]  ;;  %v3484_v53 = vor.u32 %v4694_v45, %v3481_v46  ;;  %v4867_v45 = vld [vmem:[#allocation8 + $0x16c] sm:$0xf0] }
  0xbc   :  { %1618 = vmatpush.bf16.msrb.mxu2 %v3244_v10  ;;  %v3529_v10 = vld [vmem:[#allocation5 + $0x298] sm:$0xf0]  ;;  %v3932_v20 = vor.u32 %v4806_v11, %v3929_v12  ;;  %v4758_v56 = vld [vmem:[#allocation5 + $0x42c] sm:$0xf] }
  0xbd   :  { %1633 = vmatpush.bf16.msrb.mxu0 %v3356_v30  ;;  %v3532_v16 = vor.u32 %v4706_v9, %v3529_v10  ;;  %v3769_v30 = vld [vmem:[#allocation5 + $0x478] sm:$0xf0]  ;;  %v4690_v61 = vld [vmem:[#allocation5 + $0x20c] sm:$0xf] }
  0xbe   :  { %1578 = vmatpush.bf16.msra.mxu1 %v3720_v29  ;;  %v4766_v29 = vld [vmem:[#allocation5 + $0x46c] sm:$0xf]  ;;  %v3468_v6 = vor.u32 %v4690_v61, %v3465_v62  ;;  %v3721_v10 = vld [vmem:[#allocation5 + $0x418] sm:$0xf0]  ;;  %v4003_v62 = vld [vmem:[#allocation8 + $0x20] sm:$0xf] }
  0xbf   :  { %1591 = vmatpush.bf16.msrb.mxu3 %v3864_v25  ;;  %v3788_v25 = vor.u32 %v4770_v18, %v3785_v19  ;;  %v3772_v36 = vor.u32 %v4766_v29, %v3769_v30  ;;  %v4790_v63 = vld [vmem:[#allocation5 + $0x52c] sm:$0xf]  ;;  %v4883_v18 = vld [vmem:[#allocation8 + $0x1ec] sm:$0xf0]  ;;  %v4067_v30 = vld [vmem:[#allocation8 + $0xa0] sm:$0xf] }
  0xc0   :  { %1619 = vmatpush.bf16.msrb.mxu2 %v3228_v22  ;;  %v3513_v22 = vld [vmem:[#allocation5 + $0x278] sm:$0xf0]  ;;  %v4722_v5 = vld [vmem:[#allocation5 + $0x30c] sm:$0xf] }
  0xc1   :  { %1579 = vmatmul.bf16.vlgmr.msra.gmra.mxu1 %v5276_v37  ;;  %1634 = vmatpush.bf16.msrb.mxu0 %v3340_v52  ;;  %v3516_v27 = vor.u32 %v4702_v21, %v3513_v22  ;;  %v4726_v52 = vld [vmem:[#allocation5 + $0x32c] sm:$0xf] }
  0xc2   :  { %1641 = vmatpush.bf16.msrb.mxu1 %v3580_v34  ;;  %v3897_v34 = vld [vmem:[#allocation5 + $0x578] sm:$0xf0]  ;;  %v4754_v9 = vld [vmem:[#allocation5 + $0x40c] sm:$0xf] }
  0xc3   :  { %1592 = vmatpush.bf16.msrb.mxu3 %v3848_v44  ;;  %v3900_v44 = vor.u32 %v4798_v33, %v3897_v34  ;;  %v4786_v12 = vld [vmem:[#allocation5 + $0x50c] sm:$0xf]  ;;  %v4051_v34 = vld [vmem:[#allocation8 + $0x80] sm:$0xf] }
  0xc4   :  { %1620 = vmatpush.bf16.msrb.mxu2 %v3212_v39  ;;  %1635 = vmatmul.bf16.vlgmr.msrb.gmra.mxu0 %v5268_v8  ;;  %v3497_v8 = vld [vmem:[#allocation5 + $0x258] sm:$0xf0]  ;;  %v5312_v46 = vpop.f32.mrf.mxu1 }
  0xc5   :  { %1683 = vmatpush.bf16.msra.mxu0 %v3964_v57  ;;  %v3500_v39 = vor.u32 %v4698_v32, %v3497_v8  ;;  %v3737_v57 = vld [vmem:[#allocation5 + $0x438] sm:$0xf0]  ;;  %v5300_v22 = vpop.f32.mrf.mxu2  ;;  %v4195_v32 = vld [vmem:[#allocation8 + $0x1a0] sm:$0xf]  ;;  %v4875_v8 = vld [vmem:[#allocation8 + $0x1ac] sm:$0xf0] }
  0xc6   :  { %1642 = vmatpush.bf16.msrb.mxu1 %v3564_v51  ;;  %1593 = vmatmul.bf16.vlgmr.msrb.gmra.mxu3 %v5278_v42  ;;  %v3756_v51 = vor.u32 %v4762_v41, %v3753_v43  ;;  %v3740_v4 = vor.u32 %v4758_v56, %v3737_v57  ;;  %v4035_v43 = vld [vmem:[#allocation8 + $0x60] sm:$0xf] }
  0xc7   :  { %1655 = vmatpush.bf16.msra.mxu3 %v3708_v47  ;;  %1621 = vmatmul.bf16.vlgmr.msrb.gmra.mxu2 %v5262_v58  ;;  %v3913_v58 = vld [vmem:[#allocation5 + $0x598] sm:$0xf0]  ;;  %v4794_v47 = vld [vmem:[#allocation5 + $0x54c] sm:$0xf]  ;;  %v5308_v40 = vpop.f32.mrf.mxu3 }
  0xc8   :  { %1669 = vmatpush.bf16.msra.mxu2 %v3836_v48  ;;  %v3916_v31 = vor.u32 %v4802_v23, %v3913_v58  ;;  %v3881_v48 = vld [vmem:[#allocation5 + $0x558] sm:$0xf0]  ;;  %v4228_v58 = vor.u32 %v4883_v18, %v4227_v17 }
  0xc9   :  { %1684 = vmatpush.bf16.msra.mxu0 %v3948_v7  ;;  %v3884_v59 = vor.u32 %v4794_v47, %v3881_v48  ;;  %v3593_v7 = vld [vmem:[#allocation5 + $0x318] sm:$0xf0] }
  0xca   :  { %1643 = vmatpush.bf16.msrb.mxu1 %v3548_v3  ;;  %v3612_v3 = vor.u32 %v4726_v52, %v3609_v55  ;;  %v3596_v19 = vor.u32 %v4722_v5, %v3593_v7  ;;  %v4147_v52 = vld [vmem:[#allocation8 + $0x140] sm:$0xf] }
  0xcb   :  { %1656 = vmatpush.bf16.msra.mxu3 %v3692_v0  ;;  %v3865_v0 = vld [vmem:[#allocation5 + $0x538] sm:$0xf0]  ;;  %v4115_v7 = vld [vmem:[#allocation8 + $0x100] sm:$0xf] }
  0xcc   :  { %1670 = vmatpush.bf16.msra.mxu2 %v3820_v1  ;;  %v4818_v1 = vld [vmem:[#allocation5 + $0x60c] sm:$0xf]  ;;  %v3868_v11 = vor.u32 %v4790_v63, %v3865_v0  ;;  %v4827_v63 = vld [vmem:[#allocation8 + $0x2c] sm:$0xf0]  ;;  %v4131_v0 = vld [vmem:[#allocation8 + $0x120] sm:$0xf]  ;;  %v5322_v5 = vpop.f32.mrf.mxu1 }
  0xcd   :  { %1685 = vmatpush.bf16.msra.mxu0 %v3932_v20  ;;  %v3724_v20 = vor.u32 %v4754_v9, %v3721_v10  ;;  %v5310_v41 = vpop.f32.mrf.mxu2  ;;  %v4855_v9 = vld [vmem:[#allocation8 + $0x10c] sm:$0xf0]  ;;  %v4849_v10 = vld [vmem:[#allocation8 + $0xe4] sm:$0xf] }
  0xce   :  { %1644 = vmatpush.bf16.msrb.mxu1 %v3532_v16  ;;  %v3849_v16 = vld [vmem:[#allocation5 + $0x518] sm:$0xf0]  ;;  %v4116_v18 = vor.u32 %v4855_v9, %v4115_v7  ;;  %v4857_v9 = vld [vmem:[#allocation8 + $0x124] sm:$0xf] }
  0xcf   :  { %1657 = vmatpush.bf16.msra.mxu3 %v3676_v13  ;;  %v3980_v13 = vor.u32 %v4818_v1, %v3977_v2  ;;  %v3852_v23 = vor.u32 %v4786_v12, %v3849_v16  ;;  %v4859_v1 = vld [vmem:[#allocation8 + $0x12c] sm:$0xf0]  ;;  %v4004_v2 = vor.u32 %v4827_v63, %v4003_v62  ;;  %v4881_v12 = vld [vmem:[#allocation8 + $0x1e4] sm:$0xf]  ;;  %v4149_v63 = vld [vmem:[#allocation8 + $0x150] sm:$0xf0] }
  0xd0   :  { %1671 = vmatpush.bf16.msra.mxu2 %v3804_v14  ;;  %v4099_v14 = vld [vmem:[#allocation8 + $0xe0] sm:$0xf]  ;;  %v4861_v62 = vld [vmem:[#allocation8 + $0x144] sm:$0xf] }
  0xd1   :  { %1686 = vmatpush.bf16.msra.mxu0 %v3916_v31  ;;  %v4100_v21 = vor.u32 %v4851_v15, %v4099_v14  ;;  %v4843_v31 = vld [vmem:[#allocation8 + $0xac] sm:$0xf0] }
  0xd2   :  { %1645 = vmatpush.bf16.msrb.mxu1 %v3516_v27  ;;  %v4879_v27 = vld [vmem:[#allocation8 + $0x1cc] sm:$0xf0]  ;;  %v4068_v33 = vor.u32 %v4843_v31, %v4067_v30  ;;  %v4873_v30 = vld [vmem:[#allocation8 + $0x1a4] sm:$0xf]  ;;  %v4197_v31 = vld [vmem:[#allocation8 + $0x1b0] sm:$0xf0] }
  0xd3   :  { %1658 = vmatpush.bf16.msra.mxu3 %v3660_v24  ;;  %v4083_v24 = vld [vmem:[#allocation8 + $0xc0] sm:$0xf]  ;;  %v4212_v29 = vor.u32 %v4879_v27, %v4211_v26 }
  0xd4   :  { %1672 = vmatpush.bf16.msra.mxu2 %v3788_v25  ;;  %v4847_v25 = vld [vmem:[#allocation8 + $0xcc] sm:$0xf0] }
  0xd5   :  { %1687 = vmatpush.bf16.msra.mxu0 %v3900_v44  ;;  %v4084_v28 = vor.u32 %v4847_v25, %v4083_v24  ;;  %v4163_v44 = vld [vmem:[#allocation8 + $0x160] sm:$0xf]  ;;  %v5314_v55 = vpop.f32.mrf.mxu2  ;;  %v4213_v24 = vld [vmem:[#allocation8 + $0x1d0] sm:$0xf0] }
  0xd6   :  { %1646 = vmatpush.bf16.msrb.mxu1 %v3500_v39  ;;  %v4871_v39 = vld [vmem:[#allocation8 + $0x18c] sm:$0xf0]  ;;  %v4164_v48 = vor.u32 %v4867_v45, %v4163_v44  ;;  %v4037_v44 = vld [vmem:[#allocation8 + $0x70] sm:$0xf0] }
  0xd7   :  { %1659 = vmatpush.bf16.msra.mxu3 %v3644_v35  ;;  %v4839_v35 = vld [vmem:[#allocation8 + $0x8c] sm:$0xf0] }
  0xd8   :  { %1673 = vmatpush.bf16.msra.mxu2 %v3772_v36  ;;  %v5306_v36 = vpop.f32.mrf.mxu0 }
  0xd9   :  { %1688 = vmatpush.bf16.msra.mxu0 %v3884_v59  ;;  %v5320_v59 = vpop.f32.mrf.mxu3 }
  0xda   :  { %1647 = vmatpush.bf16.msrb.mxu1 %v3484_v53  ;;  %v4863_v53 = vld [vmem:[#allocation8 + $0x14c] sm:$0xf0] }
  0xdb   :  { %1660 = vmatpush.bf16.msra.mxu3 %v3628_v49  ;;  %v4019_v49 = vld [vmem:[#allocation8 + $0x40] sm:$0xf]  ;;  %v4148_v61 = vor.u32 %v4863_v53, %v4147_v52  ;;  %v4829_v52 = vld [vmem:[#allocation8 + $0x44] sm:$0xf]  ;;  %v4021_v53 = vld [vmem:[#allocation8 + $0x50] sm:$0xf0] }
  0xdc   :  { %1674 = vmatpush.bf16.msra.mxu2 %v3756_v51  ;;  %v4831_v51 = vld [vmem:[#allocation8 + $0x4c] sm:$0xf0] }
  0xdd   :  { %1689 = vmatpush.bf16.msra.mxu0 %v3868_v11  ;;  %v4020_v57 = vor.u32 %v4831_v51, %v4019_v49  ;;  %v4101_v11 = vld [vmem:[#allocation8 + $0xf0] sm:$0xf0]  ;;  %v5326_v16 = vpop.f32.mrf.mxu2 }
  0xde   :  { %1648 = vmatpush.bf16.msrb.mxu1 %v3468_v6  ;;  %v4823_v6 = vld [vmem:[#allocation8 + $0xc] sm:$0xf0]  ;;  %v5328_v25 = vpop.f32.mrf.mxu1 }
  0xdf   :  { %1661 = vmatpush.bf16.msra.mxu3 %v3612_v3  ;;  %v3987_v3 = vld [vmem:[#allocation8] sm:$0xf] }
  0xe0   :  { %1675 = vmatpush.bf16.msra.mxu2 %v3740_v4  ;;  %v5318_v56 = vpop.f32.mrf.mxu0  ;;  %v1715_v4 = vld [vmem:[#allocation7] sm:$0xf]  ;;  %v3988_v15 = vor.u32 %v4823_v6, %v3987_v3  ;;  %v4005_v6 = vld [vmem:[#allocation8 + $0x30] sm:$0xf0] }
  0xe1   :  { %1649 = vmatmul.bf16.vlgmr.msrb.gmra.mxu1 %v5260_v54  ;;  %1690 = vmatpush.bf16.msra.mxu0 %v3852_v23  ;;  %v4196_v54 = vor.u32 %v4875_v8, %v4195_v32  ;;  %1717 = vst [vmem:[#allocation1] ss:$9 sm:$0xff] %v1715_v4  ;;  %v4085_v23 = vld [vmem:[#allocation8 + $0xd0] sm:$0xf0]  ;;  %v4152_v4 = vor.u32 %v4861_v62, %v4149_v63  ;;  %v4915_v62 = vld [vmem:[#allocation8 + $0x2ec] sm:$0xf0] }
  0xe2   :  { %1704 = vmatpush.bf16.msra.mxu1 %v3980_v13  ;;  %v4229_v13 = vld [vmem:[#allocation8 + $0x1f0] sm:$0xf0]  ;;  %v4483_v63 = vld [vmem:[#allocation8 + $0x3e0] sm:$0xf] }
  0xe3   :  { %1662 = vmatpush.bf16.msra.mxu3 %v3596_v19  ;;  %v4104_v19 = vor.u32 %v4849_v10, %v4101_v11  ;;  %v4133_v10 = vld [vmem:[#allocation8 + $0x130] sm:$0xf0] }
  0xe4   :  { %1676 = vmatpush.bf16.msra.mxu2 %v3724_v20  ;;  %1691 = vmatmul.bf16.vlgmr.msra.gmra.mxu0 %v5278_v42  ;;  %v4835_v42 = vld [vmem:[#allocation8 + $0x6c] sm:$0xf0]  ;;  %v4232_v20 = vor.u32 %v4881_v12, %v4229_v13  ;;  %v1345_v13 = vadd.f32 %v5322_v5, %v5318_v56 }
  0xe5   :  { %v4036_v47 = vor.u32 %v4835_v42, %v4035_v43  ;;  %v1426_v17 = vpop.f32.mrf.mxu3  ;;  %v4833_v42 = vld [vmem:[#allocation8 + $0x64] sm:$0xf] }
  0xe6   :  { %2560 = vmatpush.bf16.msrb.mxu1 %v4228_v58  ;;  %1663 = vmatmul.bf16.vlgmr.msra.gmra.mxu3 %v5264_v60  ;;  %v4052_v60 = vor.u32 %v4839_v35, %v4051_v34  ;;  %v4877_v58 = vld [vmem:[#allocation8 + $0x1c4] sm:$0xf]  ;;  %v4053_v34 = vld [vmem:[#allocation8 + $0x90] sm:$0xf0]  ;;  %v5332_v45 = vpop.f32.mrf.mxu1  ;;  %v4040_v49 = vor.u32 %v4833_v42, %v4037_v44 }
  0xe7   :  { %2546 = vmatpush.bf16.msrb.mxu3 %v4100_v21  ;;  %1677 = vmatmul.bf16.vlgmr.msra.gmra.mxu2 %v5276_v37  ;;  %v4180_v37 = vor.u32 %v4871_v39, %v4179_v38  ;;  %v4845_v21 = vld [vmem:[#allocation8 + $0xc4] sm:$0xf]  ;;  %v4216_v27 = vor.u32 %v4877_v58, %v4213_v24  ;;  %v1359_v58 = vadd.f32 %v5310_v41, %v1345_v13  ;;  %v4235_v13 = vld [vmem:[#allocation8 + $0x1e8] sm:$0xf] }
  0xe8   :  { %v5324_v14 = vpop.f32.mrf.mxu0  ;;  %v4088_v26 = vor.u32 %v4845_v21, %v4085_v23  ;;  %v4869_v39 = vld [vmem:[#allocation8 + $0x184] sm:$0xf] }
  0xea   :  { %2561 = vmatpush.bf16.msrb.mxu1 %v4212_v29  ;;  %v4069_v29 = vld [vmem:[#allocation8 + $0xb0] sm:$0xf0]  ;;  %v1440_v35 = vpop.f32.mrf.mxu2 }
  0xeb   :  { %2547 = vmatpush.bf16.msrb.mxu3 %v4084_v28  ;;  %v4841_v28 = vld [vmem:[#allocation8 + $0xa4] sm:$0xf]  ;;  %v1441_v3 = vadd.f32 %v1440_v35, %v1426_v17 }
  0xec   :  { %v4072_v32 = vor.u32 %v4841_v28, %v4069_v29 }
  0xed   :  { %v1428_v38 = vpop.f32.mrf.mxu3 }
  0xee   :  { %2562 = vmatpush.bf16.msrb.mxu1 %v4196_v54  ;;  %v4837_v54 = vld [vmem:[#allocation8 + $0x84] sm:$0xf] }
  0xef   :  { %2548 = vmatpush.bf16.msrb.mxu3 %v4068_v33  ;;  %v4200_v33 = vor.u32 %v4873_v30, %v4197_v31  ;;  %v1718_v30 = vld [vmem:[#allocation1] sm:$0xff]  ;;  %v1373_v31 = vadd.f32 %v5320_v59, %v1359_v58  ;;  %v4848_v58 = vld [vmem:[#allocation8 + $0xd4] sm:$0xf0] }
  0xf0   :  { %v5330_v8 = vpop.f32.mrf.mxu0  ;;  %v1722_v35 = vpack.i.b16 %v1718_v30, %v1718_v30  ;;  %v4451_v30 = vld [vmem:[#allocation8 + $0x3a0] sm:$0xf] }
  0xf1   :  { %3984 = vmatmul.msk.bf16.vlgmr.msra.gmra.mxu1 %vm1315_vm0, %v5272_v50  ;;  %v4132_v50 = vor.u32 %v4859_v1, %v4131_v0  ;;  %v1343_v0 = vadd.f32 %v5312_v46, %v5306_v36  ;;  %v4136_v36 = vor.u32 %v4857_v9, %v4133_v10  ;;  %v4821_v46 = vld [vmem:[#allocation8 + $0x4] sm:$0xf]  ;;  %v4911_v9 = vld [vmem:[#allocation8 + $0x2cc] sm:$0xf0]  ;;  %v4467_v10 = vld [vmem:[#allocation8 + $0x3c0] sm:$0xf] }
  0xf2   :  { %2563 = vmatpush.bf16.msrb.mxu1 %v4180_v37  ;;  %v4056_v37 = vor.u32 %v4837_v54, %v4053_v34  ;;  %v1442_v1 = vpop.f32.mrf.mxu2  ;;  %v1387_v54 = vadd.f32 %v5330_v8, %v1373_v31  ;;  %v1724_v42 = vperm.slane %v1722_v35, 0  ;;  %v4939_v31 = vld [vmem:[#allocation8 + $0x3ac] sm:$0xf0] }
  0xf3   :  { %2549 = vmatpush.bf16.msrb.mxu3 %v4052_v60  ;;  %v4181_v60 = vld [vmem:[#allocation8 + $0x190] sm:$0xf0]  ;;  %v1357_v11 = vadd.f32 %v5300_v22, %v1343_v0  ;;  %v1443_v5 = vadd.f32 %v1442_v1, %v1428_v38  ;;  %v4947_v1 = vld [vmem:[#allocation8 + $0x3ec] sm:$0xf0] }
  0xf4   :  { %v4184_v43 = vor.u32 %v4869_v39, %v4181_v60 }
  0xf5   :  { %v1371_v21 = vadd.f32 %v5308_v40, %v1357_v11 }
  0xf6   :  { %2564 = vmatpush.bf16.msrb.mxu1 %v4164_v48  ;;  %v4165_v48 = vld [vmem:[#allocation8 + $0x170] sm:$0xf0] }
  0xf7   :  { %2550 = vmatpush.bf16.msrb.mxu3 %v4036_v47  ;;  %v4865_v47 = vld [vmem:[#allocation8 + $0x164] sm:$0xf]  ;;  %v1385_v56 = vadd.f32 %v5324_v14, %v1371_v21 }
  0xf8   :  { %v4168_v51 = vor.u32 %v4865_v47, %v4165_v48 }
  0xf9   :  { %v1399_v40 = vadd.f32 %v5328_v25, %v1385_v56  ;;  %v4323_v56 = vld [vmem:[#allocation8 + $0x2a0] sm:$0xf] }
  0xfa   :  { %2565 = vmatpush.bf16.msrb.mxu1 %v4148_v61 }
  0xfb   :  { %2551 = vmatpush.bf16.msrb.mxu3 %v4020_v57  ;;  %v1413_v60 = vadd.f32 %v5314_v55, %v1399_v40  ;;  %v4452_v40 = vor.u32 %v4939_v31, %v4451_v30  ;;  %v4243_v31 = vld [vmem:[#allocation8 + $0x200] sm:$0xf] }
  0xfd   :  { %v1454_v57 = vpop.f32.mrf.mxu0 }
  0xfe   :  { %2566 = vmatpush.bf16.msrb.mxu1 %v4132_v50  ;;  %v4825_v50 = vld [vmem:[#allocation8 + $0x24] sm:$0xf]  ;;  %v1468_v7 = vpop.f32.mrf.mxu1  ;;  %v1455_v12 = vadd.f32 %v1454_v57, %v1441_v3 }
  0xff   :  { %2552 = vmatpush.bf16.msrb.mxu3 %v4004_v2  ;;  %v4024_v2 = vor.u32 %v4829_v52, %v4021_v53 }
 0x100   :  { %v1469_v23 = vadd.f32 %v1468_v7, %v1455_v12  ;;  %v4852_v7 = vld [vmem:[#allocation8 + $0xf4] sm:$0xf0] }
 0x102   :  { %2567 = vmatpush.bf16.msrb.mxu1 %v4116_v18  ;;  %v3989_v18 = vld [vmem:[#allocation8 + $0x10] sm:$0xf0] }
 0x103   :  { %2553 = vmatpush.bf16.msrb.mxu3 %v3988_v15  ;;  %v4008_v15 = vor.u32 %v4825_v50, %v4005_v6  ;;  %v4107_v6 = vld [vmem:[#allocation8 + $0xe8] sm:$0xf] }
 0x105   :  { %v1482_v61 = vpop.f32.mrf.mxu3  ;;  %v1456_v24 = vpop.f32.mrf.mxu0 }
 0x106   :  { %2616 = vmatpush.bf16.msra.mxu1 %v4232_v20  ;;  %v4117_v20 = vld [vmem:[#allocation8 + $0x110] sm:$0xf0]  ;;  %v1457_v29 = vadd.f32 %v1456_v24, %v1443_v5  ;;  %v4108_v24 = vor.u32 %v4852_v7, %v4107_v6  ;;  %v4907_v5 = vld [vmem:[#allocation8 + $0x2ac] sm:$0xf0]  ;;  %v4171_v6 = vld [vmem:[#allocation8 + $0x168] sm:$0xf] }
 0x107   :  { %2602 = vmatpush.bf16.msra.mxu3 %v4104_v19  ;;  %v4853_v19 = vld [vmem:[#allocation8 + $0x104] sm:$0xf]  ;;  %v4868_v7 = vld [vmem:[#allocation8 + $0x174] sm:$0xf0] }
 0x108   :  { %v4120_v28 = vor.u32 %v4853_v19, %v4117_v20 }
 0x10a   :  { %2617 = vmatpush.bf16.msra.mxu1 %v4216_v27  ;;  %v1496_v22 = vpop.f32.mrf.mxu2  ;;  %v1483_v27 = vadd.f32 %v1482_v61, %v1469_v23  ;;  %v4355_v61 = vld [vmem:[#allocation8 + $0x2e0] sm:$0xf]  ;;  %v4091_v23 = vld [vmem:[#allocation8 + $0xc8] sm:$0xf] }
 0x10b   :  { %2603 = vmatpush.bf16.msra.mxu3 %v4088_v26  ;;  %v3992_v26 = vor.u32 %v4821_v46, %v3989_v18  ;;  %v4356_v0 = vor.u32 %v4915_v62, %v4355_v61  ;;  %v4943_v46 = vld [vmem:[#allocation8 + $0x3cc] sm:$0xf0] }
 0x10c   :  { %v1497_v41 = vadd.f32 %v1496_v22, %v1483_v27  ;;  %v4468_v18 = vor.u32 %v4943_v46, %v4467_v10  ;;  %v4931_v61 = vld [vmem:[#allocation8 + $0x36c] sm:$0xf0] }
 0x10d   :  { %v1484_v17 = vpop.f32.mrf.mxu3  ;;  %2574 = vmatpush.bf16.msrb.mxu2 %v4356_v0  ;;  %v4836_v0 = vld [vmem:[#allocation8 + $0x74] sm:$0xf0]  ;;  %v4891_v46 = vld [vmem:[#allocation8 + $0x22c] sm:$0xf0] }
 0x10e   :  { %2618 = vmatpush.bf16.msra.mxu1 %v4200_v33  ;;  %v1719_v33 = vld [vmem:[#allocation1 + $0x9] sm:$0xff] }
 0x10f   :  { %2604 = vmatpush.bf16.msra.mxu3 %v4072_v32  ;;  %v1470_v32 = vpop.f32.mrf.mxu1  ;;  %v1725_v39 = vpack.i.b16 %v1719_v33, %v1719_v33  ;;  %v4324_v33 = vor.u32 %v4907_v5, %v4323_v56 }
 0x110   :  { %v1471_v14 = vadd.f32 %v1470_v32, %v1457_v29  ;;  %v4880_v29 = vld [vmem:[#allocation8 + $0x1d4] sm:$0xf0] }
 0x111   :  { %v1727_v47 = vperm.slane %v1725_v39, 0  ;;  %v4435_v39 = vld [vmem:[#allocation8 + $0x380] sm:$0xf] }
 0x112   :  { %2619 = vmatpush.bf16.msra.mxu1 %v4184_v43  ;;  %v1401_v43 = vadd.f32 %v5332_v45, %v1387_v54  ;;  %v1498_v59 = vpop.f32.mrf.mxu2  ;;  %v4484_v45 = vor.u32 %v4947_v1, %v4483_v63  ;;  %v4844_v54 = vld [vmem:[#allocation8 + $0xb4] sm:$0xf0] }
 0x113   :  { %2605 = vmatpush.bf16.msra.mxu3 %v4056_v37  ;;  %v1485_v37 = vadd.f32 %v1484_v17, %v1471_v14  ;;  %v1743_v53 = vunpack.c.l.bf16 %v1727_v47  ;;  %v4307_v14 = vld [vmem:[#allocation8 + $0x280] sm:$0xf]  ;;  %v4840_v47 = vld [vmem:[#allocation8 + $0x94] sm:$0xf0] }
 0x114   :  { %v1415_v25 = vadd.f32 %v5326_v16, %v1401_v43  ;;  %2588 = vmatpush.bf16.msrb.mxu0 %v4484_v45  ;;  %v4339_v16 = vld [vmem:[#allocation8 + $0x2c0] sm:$0xf] }
 0x115   :  { %v1510_v34 = vpop.f32.mrf.mxu3  ;;  %v1499_v48 = vadd.f32 %v1498_v59, %v1485_v37  ;;  %v4876_v37 = vld [vmem:[#allocation8 + $0x1b4] sm:$0xf0]  ;;  %v4935_v59 = vld [vmem:[#allocation8 + $0x38c] sm:$0xf0] }
 0x116   :  { %2620 = vmatpush.bf16.msra.mxu1 %v4168_v51  ;;  %v1511_v38 = vadd.f32 %v1510_v34, %v1497_v41  ;;  %v4075_v41 = vld [vmem:[#allocation8 + $0xa8] sm:$0xf]  ;;  %v4092_v34 = vor.u32 %v4848_v58, %v4091_v23 }
 0x117   :  { %2606 = vmatpush.bf16.msra.mxu3 %v4040_v49  ;;  %v1742_v49 = vunpack.c.l.bf16 %v1724_v42  ;;  %v4436_v42 = vor.u32 %v4935_v59, %v4435_v39  ;;  %v4011_v58 = vld [vmem:[#allocation8 + $0x28] sm:$0xf] }
 0x118   :  { %v1711_v44 = vpack.c.bf16 %v1511_v38, %v1413_v60  ;;  %2589 = vmatpush.bf16.msrb.mxu0 %v4468_v18  ;;  %v4903_v38 = vld [vmem:[#allocation8 + $0x28c] sm:$0xf0]  ;;  %v4203_v60 = vld [vmem:[#allocation8 + $0x1a8] sm:$0xf]  ;;  %v4387_v18 = vld [vmem:[#allocation8 + $0x320] sm:$0xf] }
 0x119   :  { %v4308_v43 = vor.u32 %v4903_v38, %v4307_v14  ;;  %v4913_v14 = vld [vmem:[#allocation8 + $0x2e4] sm:$0xf]  ;;  %v4357_v38 = vld [vmem:[#allocation8 + $0x2f0] sm:$0xf0]  ;;  %v3995_v59 = vld [vmem:[#allocation8 + $0x8] sm:$0xf] }
 0x11a   :  { %2621 = vmatpush.bf16.msra.mxu1 %v4152_v4  ;;  %v1734_v8 = vunpack.c.l.bf16 %v1711_v44  ;;  %v1735_v52 = vunpack.c.h.bf16 %v1711_v44  ;;  %v4059_v44 = vld [vmem:[#allocation8 + $0x88] sm:$0xf] }
 0x11b   :  { %2607 = vmatpush.bf16.msra.mxu3 %v4024_v2  ;;  %v4060_v45 = vor.u32 %v4840_v47, %v4059_v44  ;;  %v4123_v44 = vld [vmem:[#allocation8 + $0x108] sm:$0xf] }
 0x11c   :  { %v1746_v2 = vadd.f32 %v1742_v49, %v1734_v8  ;;  %v1747_v3 = vadd.f32 %v1743_v53, %v1735_v52  ;;  %2590 = vmatpush.bf16.msrb.mxu0 %v4452_v40  ;;  %v4419_v8 = vld [vmem:[#allocation8 + $0x360] sm:$0xf]  ;;  %v4187_v52 = vld [vmem:[#allocation8 + $0x188] sm:$0xf] }
 0x11d   :  { %v1512_v51 = vpop.f32.mrf.mxu3  ;;  %v5352_v32 = vpop.f32.mrf.mxu0  ;;  %v4420_v62 = vor.u32 %v4931_v61, %v4419_v8  ;;  %v4371_v40 = vld [vmem:[#allocation8 + $0x300] sm:$0xf]  ;;  %v4109_v8 = vld [vmem:[#allocation8 + $0xf8] sm:$0xf0]  ;;  %v4882_v61 = vld [vmem:[#allocation8 + $0x1ec] sm:$0xf] }
 0x11e   :  { %2622 = vmatpush.bf16.msra.mxu1 %v4136_v36  ;;  %v1513_v57 = vadd.f32 %v1512_v51, %v1499_v48  ;;  %v4340_v36 = vor.u32 %v4911_v9, %v4339_v16  ;;  %v1766_v17 = vmax.f32 %v1746_v2, 0.0  ;;  %v1767_v19 = vmax.f32 %v1747_v3, 0.0  ;;  %v4899_v51 = vld [vmem:[#allocation8 + $0x26c] sm:$0xf0]  ;;  %v5356_v63 = vpop.f32.mrf.mxu1  ;;  %v4275_v3 = vld [vmem:[#allocation8 + $0x240] sm:$0xf] }
 0x11f   :  { %2608 = vmatpush.bf16.msra.mxu3 %v4008_v15  ;;  %v4884_v15 = vld [vmem:[#allocation8 + $0x1f4] sm:$0xf0]  ;;  %v4076_v48 = vor.u32 %v4844_v54, %v4075_v41  ;;  %v4927_v9 = vld [vmem:[#allocation8 + $0x34c] sm:$0xf0] }
 0x120   :  { %v1713_v55 = vpack.c.bf16 %v1513_v57, %v1415_v25  ;;  %2575 = vmatpush.bf16.msrb.mxu2 %v4340_v36  ;;  %v4236_v22 = vor.u32 %v4884_v15, %v4235_v13  ;;  %v4204_v25 = vor.u32 %v4876_v37, %v4203_v60  ;;  %2591 = vmatpush.bf16.msrb.mxu0 %v4436_v42  ;;  %v4259_v36 = vld [vmem:[#allocation8 + $0x220] sm:$0xf]  ;;  %v4945_v37 = vld [vmem:[#allocation8 + $0x3e4] sm:$0xf]  ;;  %v4824_v42 = vld [vmem:[#allocation8 + $0x14] sm:$0xf0] }
 0x121   :  { %v4172_v15 = vor.u32 %v4868_v7, %v4171_v6  ;;  %v4360_v60 = vor.u32 %v4913_v14, %v4357_v38 }
 0x122   :  { %2623 = vmatpush.bf16.msra.mxu1 %v4120_v28  ;;  %v1738_v4 = vunpack.c.l.bf16 %v1713_v55  ;;  %v1739_v50 = vunpack.c.h.bf16 %v1713_v55  ;;  %v4043_v55 = vld [vmem:[#allocation8 + $0x68] sm:$0xf] }
 0x123   :  { %2609 = vmatpush.bf16.msra.mxu3 %v3992_v26  ;;  %v4219_v26 = vld [vmem:[#allocation8 + $0x1c8] sm:$0xf]  ;;  %v4044_v13 = vor.u32 %v4836_v0, %v4043_v55  ;;  %v4469_v0 = vld [vmem:[#allocation8 + $0x3d0] sm:$0xf0] }
 0x124   :  { %v1750_v11 = vadd.f32 %v1742_v49, %v1738_v4  ;;  %v1751_v12 = vadd.f32 %v1743_v53, %v1739_v50  ;;  %v4220_v35 = vor.u32 %v4880_v29, %v4219_v26  ;;  %2576 = vmatpush.bf16.msrb.mxu2 %v4324_v33  ;;  %v4291_v49 = vld [vmem:[#allocation8 + $0x260] sm:$0xf]  ;;  %v4872_v53 = vld [vmem:[#allocation8 + $0x194] sm:$0xf0]  ;;  %v4895_v4 = vld [vmem:[#allocation8 + $0x24c] sm:$0xf0]  ;;  %2592 = vmatpush.bf16.msrb.mxu0 %v4420_v62 }
 0x125   :  { %v4292_v57 = vor.u32 %v4899_v51, %v4291_v49  ;;  %v5358_v1 = vpop.f32.mrf.mxu0  ;;  %v4188_v2 = vor.u32 %v4872_v53, %v4187_v52  ;;  %v4403_v50 = vld [vmem:[#allocation8 + $0x340] sm:$0xf]  ;;  %v4276_v16 = vor.u32 %v4895_v4, %v4275_v3  ;;  %v4860_v26 = vld [vmem:[#allocation8 + $0x134] sm:$0xf0]  ;;  %v4887_v33 = vld [vmem:[#allocation8 + $0x20c] sm:$0xf0] }
 0x126   :  { %v1770_v20 = vmax.f32 %v1750_v11, 0.0  ;;  %v1771_v21 = vmax.f32 %v1751_v12, 0.0  ;;  %v4404_v10 = vor.u32 %v4927_v9, %v4403_v50  ;;  %v4027_v11 = vld [vmem:[#allocation8 + $0x48] sm:$0xf]  ;;  %v4832_v12 = vld [vmem:[#allocation8 + $0x54] sm:$0xf0]  ;;  %v5368_v54 = vpop.f32.mrf.mxu1 }
 0x127   :  { %v4028_v29 = vor.u32 %v4832_v12, %v4027_v11  ;;  %v4856_v49 = vld [vmem:[#allocation8 + $0x114] sm:$0xf0]  ;;  %v4850_v51 = vld [vmem:[#allocation8 + $0xec] sm:$0xf]  ;;  %v4909_v52 = vld [vmem:[#allocation8 + $0x2c4] sm:$0xf] }
 0x128   :  { %v5348_v27 = vpack.c.bf16 %v1770_v20, %v1766_v17  ;;  %v5350_v28 = vpack.c.bf16 %v1771_v21, %v1767_v19  ;;  %2577 = vmatpush.bf16.msrb.mxu2 %v4308_v43  ;;  %v4155_v17 = vld [vmem:[#allocation8 + $0x148] sm:$0xf]  ;;  %v4864_v19 = vld [vmem:[#allocation8 + $0x154] sm:$0xf0]  ;;  %2593 = vmatpush.bf16.msrb.mxu0 %v4404_v10  ;;  %v4260_v20 = vor.u32 %v4891_v46, %v4259_v36  ;;  %v4923_v21 = vld [vmem:[#allocation8 + $0x32c] sm:$0xf0] }
 0x129   :  { %v4388_v23 = vor.u32 %v4923_v21, %v4387_v18  ;;  %v5362_v56 = vpop.f32.mrf.mxu3  ;;  %v4156_v30 = vor.u32 %v4864_v19, %v4155_v17  ;;  %v4485_v43 = vld [vmem:[#allocation8 + $0x3f0] sm:$0xf0]  ;;  %v4237_v62 = vld [vmem:[#allocation8 + $0x1f8] sm:$0xf0]  ;;  %v4124_v3 = vor.u32 %v4856_v49, %v4123_v44  ;;  %v4846_v4 = vld [vmem:[#allocation8 + $0xcc] sm:$0xf]  ;;  %v4112_v7 = vor.u32 %v4850_v51, %v4109_v8 }
 0x12a   :  { %2554 = vmatmul.bf16.vlgmr.msrb.gmra.mxu3 %v5348_v27  ;;  %2568 = vmatmul.bf16.vlgmr.msrb.gmra.mxu1 %v5350_v28  ;;  %v5366_v41 = vpop.f32.mrf.mxu2  ;;  %v4488_v47 = vor.u32 %v4945_v37, %v4485_v43  ;;  %v4341_v53 = vld [vmem:[#allocation8 + $0x2d0] sm:$0xf0]  ;;  %v4093_v50 = vld [vmem:[#allocation8 + $0xd8] sm:$0xf0]  ;;  %v4905_v9 = vld [vmem:[#allocation8 + $0x2a4] sm:$0xf] }
 0x12b   :  { %2658 = vmatpush.bf16.msrb.mxu3 %v4108_v24  ;;  %2672 = vmatpush.bf16.msrb.mxu1 %v4236_v22  ;;  %v4828_v24 = vld [vmem:[#allocation8 + $0x34] sm:$0xf0]  ;;  %v4139_v22 = vld [vmem:[#allocation8 + $0x128] sm:$0xf]  ;;  %v4344_v55 = vor.u32 %v4909_v52, %v4341_v53  ;;  %v4325_v10 = vld [vmem:[#allocation8 + $0x2b0] sm:$0xf0] }
 0x12c   :  { %2578 = vmatpush.bf16.msrb.mxu2 %v4292_v57  ;;  %2594 = vmatpush.bf16.msrb.mxu0 %v4388_v23  ;;  %v4941_v57 = vld [vmem:[#allocation8 + $0x3c4] sm:$0xf]  ;;  %v4221_v36 = vld [vmem:[#allocation8 + $0x1d8] sm:$0xf0]  ;;  %v4328_v46 = vor.u32 %v4905_v9, %v4325_v10  ;;  %v4453_v18 = vld [vmem:[#allocation8 + $0x3b0] sm:$0xf0]  ;;  %v4096_v23 = vor.u32 %v4846_v4, %v4093_v50 }
 0x12d   :  { %v5364_v5 = vpop.f32.mrf.mxu0  ;;  %v4937_v11 = vld [vmem:[#allocation8 + $0x3a4] sm:$0xf]  ;;  %v4077_v21 = vld [vmem:[#allocation8 + $0xb8] sm:$0xf0]  ;;  %v4834_v8 = vld [vmem:[#allocation8 + $0x6c] sm:$0xf] }
 0x12e   :  { %v4456_v19 = vor.u32 %v4937_v11, %v4453_v18  ;;  %v4929_v37 = vld [vmem:[#allocation8 + $0x364] sm:$0xf]  ;;  %v4045_v52 = vld [vmem:[#allocation8 + $0x78] sm:$0xf0]  ;;  %v4866_v53 = vld [vmem:[#allocation8 + $0x16c] sm:$0xf] }
 0x12f   :  { %2659 = vmatpush.bf16.msrb.mxu3 %v4092_v34  ;;  %2673 = vmatpush.bf16.msrb.mxu1 %v4220_v35  ;;  %v4244_v34 = vor.u32 %v4887_v33, %v4243_v31  ;;  %v4919_v35 = vld [vmem:[#allocation8 + $0x30c] sm:$0xf0]  ;;  %v4437_v33 = vld [vmem:[#allocation8 + $0x390] sm:$0xf0]  ;;  %v4925_v50 = vld [vmem:[#allocation8 + $0x344] sm:$0xf]  ;;  %v4048_v11 = vor.u32 %v4834_v8, %v4045_v52 }
 0x130   :  { %2579 = vmatpush.bf16.msrb.mxu2 %v4276_v16  ;;  %v4372_v39 = vor.u32 %v4919_v35, %v4371_v40  ;;  %v4240_v16 = vor.u32 %v4882_v61, %v4237_v62  ;;  %v4061_v35 = vld [vmem:[#allocation8 + $0x98] sm:$0xf0]  ;;  %v2774_v62 = vld [vmem:[#allocation10] sm:$0xf]  ;;  %v4830_v9 = vld [vmem:[#allocation8 + $0x4c] sm:$0xf] }
 0x131   :  { %v5372_v12 = vpop.f32.mrf.mxu3  ;;  %v5386_v61 = vld [vmem:[#allocation1 + $0x1b] sm:$0xff]  ;;  %v4822_v8 = vld [vmem:[#allocation8 + $0xc] sm:$0xf] }
 0x132   :  { %2595 = vmatpush.bf16.msrb.mxu0 %v4372_v39  ;;  %v5376_v17 = vpop.f32.mrf.mxu2  ;;  %v4897_v39 = vld [vmem:[#allocation8 + $0x264] sm:$0xf]  ;;  %v4029_v10 = vld [vmem:[#allocation8 + $0x58] sm:$0xf0] }
 0x133   :  { %2660 = vmatpush.bf16.msrb.mxu3 %v4076_v48  ;;  %2674 = vmatpush.bf16.msrb.mxu1 %v4204_v25  ;;  %v4012_v48 = vor.u32 %v4828_v24, %v4011_v58  ;;  %v4140_v25 = vor.u32 %v4860_v26, %v4139_v22  ;;  %v4901_v24 = vld [vmem:[#allocation8 + $0x284] sm:$0xf]  ;;  %v4309_v22 = vld [vmem:[#allocation8 + $0x290] sm:$0xf0] }
 0x134   :  { %2580 = vmatpush.bf16.msrb.mxu2 %v4260_v20  ;;  %v4842_v20 = vld [vmem:[#allocation8 + $0xac] sm:$0xf]  ;;  %v4933_v26 = vld [vmem:[#allocation8 + $0x384] sm:$0xf]  ;;  %v4312_v31 = vor.u32 %v4901_v24, %v4309_v22 }
 0x135   :  { %v4440_v40 = vor.u32 %v4933_v26, %v4437_v33  ;;  %v4080_v14 = vor.u32 %v4842_v20, %v4077_v21  ;;  %v4921_v18 = vld [vmem:[#allocation8 + $0x324] sm:$0xf]  ;;  %v4157_v20 = vld [vmem:[#allocation8 + $0x158] sm:$0xf0]  ;;  %v4032_v33 = vor.u32 %v4830_v9, %v4029_v10 }
 0x136   :  { %2644 = vmatpush.bf16.msra.mxu0 %v4488_v47  ;;  %v4421_v47 = vld [vmem:[#allocation8 + $0x370] sm:$0xf0]  ;;  %v4885_v26 = vld [vmem:[#allocation8 + $0x204] sm:$0xf] }
 0x137   :  { %2661 = vmatpush.bf16.msrb.mxu3 %v4060_v45  ;;  %2675 = vmatpush.bf16.msrb.mxu1 %v4188_v2  ;;  %v4472_v45 = vor.u32 %v4941_v57, %v4469_v0  ;;  %v3996_v2 = vor.u32 %v4824_v42, %v3995_v59  ;;  %v4870_v59 = vld [vmem:[#allocation8 + $0x18c] sm:$0xf]  ;;  %v4189_v42 = vld [vmem:[#allocation8 + $0x198] sm:$0xf0]  ;;  %v4424_v49 = vor.u32 %v4929_v37, %v4421_v47 }
 0x138   :  { %2581 = vmatpush.bf16.msrb.mxu2 %v4244_v34  ;;  %v4838_v34 = vld [vmem:[#allocation8 + $0x8c] sm:$0xf]  ;;  %v5384_v57 = vld [vmem:[#allocation1 + $0x12] sm:$0xff]  ;;  %v4192_v0 = vor.u32 %v4870_v59, %v4189_v42 }
 0x139   :  { %2776 = vst [vmem:[#allocation1] ss:$9 sm:$0xff] %v2774_v62  ;;  %v4141_v37 = vld [vmem:[#allocation8 + $0x138] sm:$0xf0]  ;;  %v4854_v62 = vld [vmem:[#allocation8 + $0x10c] sm:$0xf] }
 0x13a   :  { %2610 = vmatmul.bf16.vlgmr.msra.gmra.mxu3 %v5348_v27  ;;  %2624 = vmatmul.bf16.vlgmr.msra.gmra.mxu1 %v5350_v28 }
 0x13b   :  { %2662 = vmatpush.bf16.msrb.mxu3 %v4044_v13  ;;  %2676 = vmatpush.bf16.msrb.mxu1 %v4172_v15  ;;  %v5374_v13 = vpop.f32.mrf.mxu0  ;;  %v4878_v15 = vld [vmem:[#allocation8 + $0x1cc] sm:$0xf] }
 0x13c   :  { %2630 = vmatpush.bf16.msra.mxu2 %v4360_v60  ;;  %2645 = vmatpush.bf16.msra.mxu0 %v4472_v45  ;;  %v4224_v58 = vor.u32 %v4878_v15, %v4221_v36  ;;  %v4293_v60 = vld [vmem:[#allocation8 + $0x270] sm:$0xf0]  ;;  %v4893_v45 = vld [vmem:[#allocation8 + $0x244] sm:$0xf] }
 0x13d   :  { %v4296_v44 = vor.u32 %v4897_v39, %v4293_v60  ;;  %v4889_v36 = vld [vmem:[#allocation8 + $0x224] sm:$0xf]  ;;  %v4013_v39 = vld [vmem:[#allocation8 + $0x38] sm:$0xf0]  ;;  %v4858_v60 = vld [vmem:[#allocation8 + $0x12c] sm:$0xf] }
 0x13e   :  { %v5370_v6 = vpop.f32.mrf.mxu1 }
 0x13f   :  { %2663 = vmatpush.bf16.msrb.mxu3 %v4028_v29  ;;  %2677 = vmatpush.bf16.msrb.mxu1 %v4156_v30  ;;  %v4874_v29 = vld [vmem:[#allocation8 + $0x1ac] sm:$0xf]  ;;  %v4205_v30 = vld [vmem:[#allocation8 + $0x1b8] sm:$0xf0] }
 0x140   :  { %2631 = vmatpush.bf16.msra.mxu2 %v4344_v55  ;;  %2646 = vmatpush.bf16.msra.mxu0 %v4456_v19  ;;  %v4208_v38 = vor.u32 %v4874_v29, %v4205_v30  ;;  %v4064_v55 = vor.u32 %v4838_v34, %v4061_v35  ;;  %v4862_v19 = vld [vmem:[#allocation8 + $0x14c] sm:$0xf]  ;;  %v4245_v29 = vld [vmem:[#allocation8 + $0x210] sm:$0xf0]  ;;  %v4917_v30 = vld [vmem:[#allocation8 + $0x304] sm:$0xf] }
 0x141   :  { %v4826_v34 = vld [vmem:[#allocation8 + $0x2c] sm:$0xf]  ;;  %v4373_v35 = vld [vmem:[#allocation8 + $0x310] sm:$0xf0]  ;;  %v4248_v59 = vor.u32 %v4885_v26, %v4245_v29 }
 0x142   :  { %v4376_v42 = vor.u32 %v4917_v30, %v4373_v35  ;;  %v4016_v47 = vor.u32 %v4826_v34, %v4013_v39  ;;  %v4363_v35 = vld [vmem:[#allocation8 + $0x2e8] sm:$0xf] }
 0x143   :  { %2664 = vmatpush.bf16.msrb.mxu3 %v4012_v48  ;;  %2678 = vmatpush.bf16.msrb.mxu1 %v4140_v25  ;;  %v1636_v51 = vpop.f32.mrf.mxu0  ;;  %v4491_v39 = vld [vmem:[#allocation8 + $0x3e8] sm:$0xf] }
 0x144   :  { %2632 = vmatpush.bf16.msra.mxu2 %v4328_v46  ;;  %2647 = vmatpush.bf16.msra.mxu0 %v4440_v40  ;;  %v4261_v46 = vld [vmem:[#allocation8 + $0x230] sm:$0xf0]  ;;  %v4160_v40 = vor.u32 %v4862_v19, %v4157_v20 }
 0x145   :  { %v4264_v21 = vor.u32 %v4889_v36, %v4261_v46 }
 0x146   :  { %v5382_v48 = vpop.f32.mrf.mxu1 }
 0x147   :  { %2665 = vmatpush.bf16.msrb.mxu3 %v3996_v2  ;;  %2679 = vmatpush.bf16.msrb.mxu1 %v4124_v3  ;;  %v4277_v2 = vld [vmem:[#allocation8 + $0x250] sm:$0xf0]  ;;  %v4173_v3 = vld [vmem:[#allocation8 + $0x178] sm:$0xf0] }
 0x148   :  { %2633 = vmatpush.bf16.msra.mxu2 %v4312_v31  ;;  %2648 = vmatpush.bf16.msra.mxu0 %v4424_v49  ;;  %v4280_v4 = vor.u32 %v4893_v45, %v4277_v2  ;;  %v4176_v15 = vor.u32 %v4866_v53, %v4173_v3  ;;  %v4144_v49 = vor.u32 %v4858_v60, %v4141_v37  ;;  %v3997_v53 = vld [vmem:[#allocation8 + $0x18] sm:$0xf0]  ;;  %v4948_v60 = vld [vmem:[#allocation8 + $0x3f4] sm:$0xf0] }
 0x149   :  { %v5380_v43 = vpop.f32.mrf.mxu3 }
 0x14a   :  { %2666 = vmatmul.bf16.vlgmr.msrb.gmra.mxu3 %v5348_v27  ;;  %2680 = vmatmul.bf16.vlgmr.msrb.gmra.mxu1 %v5350_v28  ;;  %v1622_v25 = vpop.f32.mrf.mxu2 }
 0x14b   :  { %2714 = vmatpush.bf16.msra.mxu3 %v4112_v7  ;;  %2728 = vmatpush.bf16.msra.mxu1 %v4240_v16  ;;  %v4405_v7 = vld [vmem:[#allocation8 + $0x350] sm:$0xf0] }
 0x14c   :  { %2634 = vmatpush.bf16.msra.mxu2 %v4296_v44  ;;  %v4408_v16 = vor.u32 %v4925_v50, %v4405_v7  ;;  %v1637_v44 = vadd.f32 %v1636_v51, %v1622_v25  ;;  %v4000_v51 = vor.u32 %v4822_v8, %v3997_v53  ;;  %v4912_v53 = vld [vmem:[#allocation8 + $0x2d4] sm:$0xf0] }
 0x14e   :  { %2649 = vmatpush.bf16.msra.mxu0 %v4408_v16 }
 0x14f   :  { %2715 = vmatpush.bf16.msra.mxu3 %v4096_v23  ;;  %2729 = vmatpush.bf16.msra.mxu1 %v4224_v58  ;;  %v4389_v23 = vld [vmem:[#allocation8 + $0x330] sm:$0xf0] }
 0x150   :  { %2635 = vmatpush.bf16.msra.mxu2 %v4280_v4  ;;  %v4392_v24 = vor.u32 %v4921_v18, %v4389_v23 }
 0x151   :  { %v5388_v22 = vpop.f32.mrf.mxu3 }
 0x152   :  { %v1624_v31 = vpop.f32.mrf.mxu2  ;;  %2650 = vmatpush.bf16.msra.mxu0 %v4392_v24 }
 0x153   :  { %2716 = vmatpush.bf16.msra.mxu3 %v4080_v14  ;;  %2730 = vmatpush.bf16.msra.mxu1 %v4208_v38  ;;  %v1539_v14 = vadd.f32 %v5362_v56, %v5356_v63  ;;  %v1638_v38 = vpop.f32.mrf.mxu0 }
 0x154   :  { %2636 = vmatpush.bf16.msra.mxu2 %v4264_v21  ;;  %v1639_v9 = vadd.f32 %v1638_v38, %v1624_v31 }
 0x155   :  { %v1553_v52 = vadd.f32 %v5352_v32, %v1539_v14 }
 0x156   :  { %2651 = vmatpush.bf16.msra.mxu0 %v4376_v42 }
 0x157   :  { %2717 = vmatpush.bf16.msra.mxu3 %v4064_v55  ;;  %2731 = vmatpush.bf16.msra.mxu1 %v4192_v0  ;;  %v4125_v55 = vld [vmem:[#allocation8 + $0x118] sm:$0xf0]  ;;  %v1541_v0 = vadd.f32 %v5372_v12, %v5368_v54  ;;  %v1567_v4 = vadd.f32 %v5366_v41, %v1553_v52  ;;  %v1731_v41 = vpack.i.b16 %v5386_v61, %v5386_v61 }
 0x158   :  { %2637 = vmatpush.bf16.msra.mxu2 %v4248_v59  ;;  %v4128_v3 = vor.u32 %v4854_v62, %v4125_v55  ;;  %v4475_v62 = vld [vmem:[#allocation8 + $0x3c8] sm:$0xf]  ;;  %v4944_v55 = vld [vmem:[#allocation8 + $0x3d4] sm:$0xf0] }
 0x159   :  { %v1555_v7 = vadd.f32 %v5358_v1, %v1541_v0  ;;  %v1581_v16 = vadd.f32 %v5370_v6, %v1567_v4  ;;  %v1733_v21 = vperm.slane %v1731_v41, 0  ;;  %v4331_v0 = vld [vmem:[#allocation8 + $0x2a8] sm:$0xf] }
 0x15a   :  { %v4315_v4 = vld [vmem:[#allocation8 + $0x288] sm:$0xf] }
 0x15b   :  { %2718 = vmatpush.bf16.msra.mxu3 %v4048_v11  ;;  %2732 = vmatpush.bf16.msra.mxu1 %v4176_v15  ;;  %v1595_v54 = vadd.f32 %v5380_v43, %v1581_v16  ;;  %v1728_v15 = vpack.i.b16 %v5384_v57, %v5384_v57  ;;  %v1569_v36 = vadd.f32 %v5376_v17, %v1555_v7  ;;  %v1745_v26 = vunpack.c.l.bf16 %v1733_v21  ;;  %v4936_v7 = vld [vmem:[#allocation8 + $0x394] sm:$0xf0]  ;;  %v4395_v21 = vld [vmem:[#allocation8 + $0x328] sm:$0xf] }
 0x15d   :  { %v1583_v18 = vadd.f32 %v5382_v48, %v1569_v36  ;;  %v1609_v43 = vadd.f32 %v5364_v5, %v1595_v54  ;;  %v1730_v20 = vperm.slane %v1728_v15, 0  ;;  %v4900_v54 = vld [vmem:[#allocation8 + $0x274] sm:$0xf0]  ;;  %v4283_v36 = vld [vmem:[#allocation8 + $0x248] sm:$0xf] }
 0x15e   :  { %v1650_v58 = vpop.f32.mrf.mxu1 }
 0x15f   :  { %2719 = vmatpush.bf16.msra.mxu3 %v4032_v33  ;;  %2733 = vmatpush.bf16.msra.mxu1 %v4160_v40  ;;  %v1651_v63 = vadd.f32 %v1650_v58, %v1637_v44  ;;  %v1597_v23 = vadd.f32 %v5388_v22, %v1583_v18  ;;  %v1744_v24 = vunpack.c.l.bf16 %v1730_v20  ;;  %v4916_v22 = vld [vmem:[#allocation8 + $0x2f4] sm:$0xf0] }
 0x160   :  { %v4892_v20 = vld [vmem:[#allocation8 + $0x234] sm:$0xf0] }
 0x161   :  { %v1692_v32 = vpop.f32.mrf.mxu0 }
 0x163   :  { %2720 = vmatpush.bf16.msra.mxu3 %v4016_v47  ;;  %2734 = vmatpush.bf16.msra.mxu1 %v4144_v49  ;;  %v4364_v47 = vor.u32 %v4916_v22, %v4363_v35  ;;  %v4347_v49 = vld [vmem:[#allocation8 + $0x2c8] sm:$0xf]  ;;  %v4942_v35 = vld [vmem:[#allocation8 + $0x3cc] sm:$0xf] }
 0x166   :  { %v1652_v56 = vpop.f32.mrf.mxu1 }
 0x167   :  { %2721 = vmatpush.bf16.msra.mxu3 %v4000_v51  ;;  %2735 = vmatpush.bf16.msra.mxu1 %v4128_v3  ;;  %v1653_v12 = vadd.f32 %v1652_v56, %v1639_v9  ;;  %v4476_v56 = vor.u32 %v4944_v55, %v4475_v62 }
 0x169   :  { %v1664_v45 = vpop.f32.mrf.mxu3  ;;  %v1694_v61 = vpop.f32.mrf.mxu0 }
 0x16a   :  { %v1665_v2 = vadd.f32 %v1664_v45, %v1651_v63  ;;  %v1678_v25 = vpop.f32.mrf.mxu2  ;;  %2722 = vmatmul.bf16.vlgmr.msra.gmra.mxu3 %v5348_v27  ;;  %2736 = vmatmul.bf16.vlgmr.msra.gmra.mxu1 %v5350_v28  ;;  %v1611_v28 = vadd.f32 %v5374_v13, %v1597_v23  ;;  %v4492_v13 = vor.u32 %v4948_v60, %v4491_v39  ;;  %v4908_v45 = vld [vmem:[#allocation8 + $0x2b4] sm:$0xf0]  ;;  %v4906_v39 = vld [vmem:[#allocation8 + $0x2ac] sm:$0xf]  ;;  %v4333_v60 = vld [vmem:[#allocation8 + $0x2b8] sm:$0xf0] }
 0x16b   :  { %v4348_v63 = vor.u32 %v4912_v53, %v4347_v49  ;;  %v4332_v51 = vor.u32 %v4908_v45, %v4331_v0  ;;  %v4934_v49 = vld [vmem:[#allocation8 + $0x38c] sm:$0xf]  ;;  %v4445_v53 = vld [vmem:[#allocation8 + $0x398] sm:$0xf0] }
 0x16c   :  { %v1679_v50 = vadd.f32 %v1678_v25, %v1665_v2  ;;  %v4459_v2 = vld [vmem:[#allocation8 + $0x3a8] sm:$0xf]  ;;  %v4940_v25 = vld [vmem:[#allocation8 + $0x3b4] sm:$0xf0]  ;;  %v4448_v55 = vor.u32 %v4934_v49, %v4445_v53  ;;  %v4930_v0 = vld [vmem:[#allocation8 + $0x36c] sm:$0xf] }
 0x16d   :  { %v4460_v3 = vor.u32 %v4940_v25, %v4459_v2  ;;  %v4429_v45 = vld [vmem:[#allocation8 + $0x378] sm:$0xf0] }
 0x16e   :  { %v1693_v10 = vadd.f32 %v1692_v32, %v1679_v50  ;;  %v1706_v11 = vpop.f32.mrf.mxu1  ;;  %v4904_v32 = vld [vmem:[#allocation8 + $0x294] sm:$0xf0]  ;;  %v4443_v50 = vld [vmem:[#allocation8 + $0x388] sm:$0xf]  ;;  %v4432_v25 = vor.u32 %v4930_v0, %v4429_v45 }
 0x16f   :  { %v4316_v16 = vor.u32 %v4904_v32, %v4315_v4  ;;  %v4444_v9 = vor.u32 %v4936_v7, %v4443_v50  ;;  %v4926_v4 = vld [vmem:[#allocation8 + $0x34c] sm:$0xf]  ;;  %v4413_v32 = vld [vmem:[#allocation8 + $0x358] sm:$0xf0] }
 0x170   :  { %v1707_v46 = vadd.f32 %v1706_v11, %v1693_v10  ;;  %v4299_v10 = vld [vmem:[#allocation8 + $0x268] sm:$0xf]  ;;  %v4932_v11 = vld [vmem:[#allocation8 + $0x374] sm:$0xf0]  ;;  %v4416_v7 = vor.u32 %v4926_v4, %v4413_v32 }
 0x171   :  { %v1666_v1 = vpop.f32.mrf.mxu3  ;;  %v4300_v15 = vor.u32 %v4900_v54, %v4299_v10  ;;  %v4922_v10 = vld [vmem:[#allocation8 + $0x32c] sm:$0xf]  ;;  %v4397_v54 = vld [vmem:[#allocation8 + $0x338] sm:$0xf0]  ;;  %v4971_v4 = vld [vmem:[#allocation11 + $0xb0] sm:$0xff] }
 0x172   :  { %v1667_v6 = vadd.f32 %v1666_v1, %v1653_v12  ;;  %v1680_v19 = vpop.f32.mrf.mxu2  ;;  %v1712_v58 = vpack.c.bf16 %v1707_v46, %v1609_v43  ;;  %v4427_v12 = vld [vmem:[#allocation8 + $0x368] sm:$0xf]  ;;  %v4896_v46 = vld [vmem:[#allocation8 + $0x254] sm:$0xf0] }
 0x173   :  { %v4428_v41 = vor.u32 %v4932_v11, %v4427_v12  ;;  %v4411_v1 = vld [vmem:[#allocation8 + $0x348] sm:$0xf]  ;;  %v4284_v18 = vor.u32 %v4896_v46, %v4283_v36  ;;  %v4400_v11 = vor.u32 %v4922_v10, %v4397_v54  ;;  %v4918_v36 = vld [vmem:[#allocation8 + $0x30c] sm:$0xf]  ;;  %v4381_v46 = vld [vmem:[#allocation8 + $0x318] sm:$0xf0] }
 0x174   :  { %v1681_v57 = vadd.f32 %v1680_v19, %v1667_v6  ;;  %v1736_v29 = vunpack.c.l.bf16 %v1712_v58  ;;  %v1737_v30 = vunpack.c.h.bf16 %v1712_v58  ;;  %v4928_v6 = vld [vmem:[#allocation8 + $0x354] sm:$0xf0]  ;;  %v4267_v19 = vld [vmem:[#allocation8 + $0x228] sm:$0xf] }
 0x175   :  { %v4412_v43 = vor.u32 %v4928_v6, %v4411_v1  ;;  %v4268_v23 = vor.u32 %v4892_v20, %v4267_v19  ;;  %v4251_v58 = vld [vmem:[#allocation8 + $0x208] sm:$0xf]  ;;  %v4384_v6 = vor.u32 %v4918_v36, %v4381_v46  ;;  %v4955_v19 = vld [vmem:[#allocation11 + $0x30] sm:$0xff]  ;;  %v4978_v36 = vld [vmem:[#allocation11 + $0xe8] sm:$0xff] }
 0x176   :  { %v1695_v17 = vadd.f32 %v1694_v61, %v1681_v57  ;;  %v1708_v27 = vpop.f32.mrf.mxu1  ;;  %v1748_v33 = vadd.f32 %v1744_v24, %v1736_v29  ;;  %v1749_v5 = vadd.f32 %v1745_v26, %v1737_v30  ;;  %v4924_v57 = vld [vmem:[#allocation8 + $0x334] sm:$0xf0]  ;;  %v4946_v29 = vld [vmem:[#allocation8 + $0x3ec] sm:$0xf]  ;;  %v4493_v30 = vld [vmem:[#allocation8 + $0x3f8] sm:$0xf0] }
 0x177   :  { %v4396_v61 = vor.u32 %v4924_v57, %v4395_v21  ;;  %v4963_v20 = vld [vmem:[#allocation11 + $0x70] sm:$0xff]  ;;  %v4954_v21 = vld [vmem:[#allocation11 + $0x28] sm:$0xff] }
 0x178   :  { %v1709_v31 = vadd.f32 %v1708_v27, %v1695_v17  ;;  %v1768_v37 = vmax.f32 %v1748_v33, 0.0  ;;  %v1769_v59 = vmax.f32 %v1749_v5, 0.0  ;;  %v4888_v17 = vld [vmem:[#allocation8 + $0x214] sm:$0xf0]  ;;  %v4914_v27 = vld [vmem:[#allocation8 + $0x2ec] sm:$0xf]  ;;  %v4496_v5 = vor.u32 %v4946_v29, %v4493_v30 }
 0x179   :  { %v4962_v57 = vld [vmem:[#allocation11 + $0x68] sm:$0xff]  ;;  %v4979_v32 = vld [vmem:[#allocation11 + $0xf0] sm:$0xff] }
 0x17a   :  { %v1714_v48 = vpack.c.bf16 %v1709_v31, %v1611_v28  ;;  %v4365_v28 = vld [vmem:[#allocation8 + $0x2f8] sm:$0xf0]  ;;  %v4252_v31 = vor.u32 %v4888_v17, %v4251_v58  ;;  %v4958_v29 = vld [vmem:[#allocation11 + $0x48] sm:$0xff] }
 0x17b   :  { %v4368_v33 = vor.u32 %v4914_v27, %v4365_v28  ;;  %v4960_v17 = vld [vmem:[#allocation11 + $0x58] sm:$0xff]  ;;  %v4950_v28 = vld [vmem:[#allocation11 + $0x8] sm:$0xff] }
 0x17c   :  { %v1740_v40 = vunpack.c.l.bf16 %v1714_v48  ;;  %v1741_v34 = vunpack.c.h.bf16 %v1714_v48 }
 0x17e   :  { %v1752_v14 = vadd.f32 %v1744_v24, %v1740_v40  ;;  %v1753_v38 = vadd.f32 %v1745_v26, %v1741_v34  ;;  %v4379_v24 = vld [vmem:[#allocation8 + $0x308] sm:$0xf]  ;;  %v4920_v26 = vld [vmem:[#allocation8 + $0x314] sm:$0xf0]  ;;  %v4910_v40 = vld [vmem:[#allocation8 + $0x2cc] sm:$0xf] }
 0x17f   :  { %v4380_v48 = vor.u32 %v4920_v26, %v4379_v24  ;;  %v4349_v34 = vld [vmem:[#allocation8 + $0x2d8] sm:$0xf0]  ;;  %v4951_v24 = vld [vmem:[#allocation11 + $0x10] sm:$0xff] }
 0x180   :  { %v1772_v42 = vmax.f32 %v1752_v14, 0.0  ;;  %v1773_v44 = vmax.f32 %v1753_v38, 0.0  ;;  %v4477_v14 = vld [vmem:[#allocation8 + $0x3d8] sm:$0xf0]  ;;  %v4352_v38 = vor.u32 %v4910_v40, %v4349_v34  ;;  %v4959_v26 = vld [vmem:[#allocation11 + $0x50] sm:$0xff] }
 0x181   :  { %v4480_v22 = vor.u32 %v4942_v35, %v4477_v14  ;;  %v4972_v14 = vld [vmem:[#allocation11 + $0xb8] sm:$0xff] }
 0x182   :  { %v5410_v8 = vpack.c.bf16 %v1772_v42, %v1768_v37  ;;  %v5412_v52 = vpack.c.bf16 %v1773_v44, %v1769_v59  ;;  %v4938_v37 = vld [vmem:[#allocation8 + $0x3ac] sm:$0xf]  ;;  %v4461_v59 = vld [vmem:[#allocation8 + $0x3b8] sm:$0xf0]  ;;  %v4336_v42 = vor.u32 %v4906_v39, %v4333_v60 }
 0x183   :  { %v4464_v44 = vor.u32 %v4938_v37, %v4461_v59  ;;  %v2777_v37 = vld [vmem:[#allocation1] sm:$0xff]  ;;  %v2778_v59 = vld [vmem:[#allocation1 + $0x9] sm:$0xff] }
 0x184   :  { %2582 = vmatmul.bf16.vlgmr.msrb.gmra.mxu2 %v5410_v8  ;;  %2596 = vmatmul.bf16.vlgmr.msrb.gmra.mxu0 %v5412_v52  ;;  %v2781_v49 = vpack.i.b16 %v2777_v37, %v2777_v37  ;;  %v2784_v53 = vpack.i.b16 %v2778_v59, %v2778_v59 }
 0x185   :  { %2686 = vmatpush.bf16.msrb.mxu2 %v4364_v47  ;;  %2700 = vmatpush.bf16.msrb.mxu0 %v4492_v13  ;;  %v4902_v47 = vld [vmem:[#allocation8 + $0x28c] sm:$0xf]  ;;  %v4317_v13 = vld [vmem:[#allocation8 + $0x298] sm:$0xf0] }
 0x186   :  { %v4320_v62 = vor.u32 %v4902_v47, %v4317_v13  ;;  %v2783_v45 = vperm.slane %v2781_v49, 0 }
 0x189   :  { %2687 = vmatpush.bf16.msrb.mxu2 %v4348_v63  ;;  %2701 = vmatpush.bf16.msrb.mxu0 %v4476_v56  ;;  %v4898_v63 = vld [vmem:[#allocation8 + $0x26c] sm:$0xf]  ;;  %v4301_v56 = vld [vmem:[#allocation8 + $0x278] sm:$0xf0] }
 0x18a   :  { %v4304_v2 = vor.u32 %v4898_v63, %v4301_v56 }
 0x18d   :  { %2688 = vmatpush.bf16.msrb.mxu2 %v4332_v51  ;;  %2702 = vmatpush.bf16.msrb.mxu0 %v4460_v3  ;;  %v4894_v51 = vld [vmem:[#allocation8 + $0x24c] sm:$0xf]  ;;  %v4285_v3 = vld [vmem:[#allocation8 + $0x258] sm:$0xf0] }
 0x18e   :  { %v4288_v50 = vor.u32 %v4894_v51, %v4285_v3 }
 0x191   :  { %2689 = vmatpush.bf16.msrb.mxu2 %v4316_v16  ;;  %2703 = vmatpush.bf16.msrb.mxu0 %v4444_v9  ;;  %v4890_v16 = vld [vmem:[#allocation8 + $0x22c] sm:$0xf]  ;;  %v4269_v9 = vld [vmem:[#allocation8 + $0x238] sm:$0xf0] }
 0x192   :  { %v4272_v12 = vor.u32 %v4890_v16, %v4269_v9  ;;  %v2801_v16 = vunpack.c.l.bf16 %v2783_v45 }
 0x194   :  { %2638 = vmatmul.bf16.vlgmr.msra.gmra.mxu2 %v5410_v8  ;;  %2652 = vmatmul.bf16.vlgmr.msra.gmra.mxu0 %v5412_v52 }
 0x195   :  { %2690 = vmatpush.bf16.msrb.mxu2 %v4300_v15  ;;  %2704 = vmatpush.bf16.msrb.mxu0 %v4428_v41  ;;  %v4886_v15 = vld [vmem:[#allocation8 + $0x20c] sm:$0xf]  ;;  %v4253_v41 = vld [vmem:[#allocation8 + $0x218] sm:$0xf0] }
 0x196   :  { %v4256_v1 = vor.u32 %v4886_v15, %v4253_v41  ;;  %v4970_v41 = vld [vmem:[#allocation11 + $0xa8] sm:$0xff] }
 0x199   :  { %2691 = vmatpush.bf16.msrb.mxu2 %v4284_v18  ;;  %2705 = vmatpush.bf16.msrb.mxu0 %v4412_v43  ;;  %v4956_v18 = vld [vmem:[#allocation11 + $0x38] sm:$0xff] }
 0x19a   :  { %v4964_v43 = vld [vmem:[#allocation11 + $0x78] sm:$0xff]  ;;  %3097 = vmatpush.bf16.msrb.mxu3 %v4956_v18 }
 0x19b   :  { %3111 = vmatpush.bf16.msrb.mxu1 %v4964_v43 }
 0x19d   :  { %2692 = vmatpush.bf16.msrb.mxu2 %v4268_v23  ;;  %2706 = vmatpush.bf16.msrb.mxu0 %v4396_v61  ;;  %v4953_v23 = vld [vmem:[#allocation11 + $0x20] sm:$0xff] }
 0x19e   :  { %3098 = vmatpush.bf16.msrb.mxu3 %v4955_v19  ;;  %v4961_v61 = vld [vmem:[#allocation11 + $0x60] sm:$0xff] }
 0x19f   :  { %3112 = vmatpush.bf16.msrb.mxu1 %v4963_v20  ;;  %v4969_v19 = vld [vmem:[#allocation11 + $0xa0] sm:$0xff] }
 0x1a0   :  { %v4977_v20 = vld [vmem:[#allocation11 + $0xe0] sm:$0xff] }
 0x1a1   :  { %2693 = vmatpush.bf16.msrb.mxu2 %v4252_v31  ;;  %2707 = vmatpush.bf16.msrb.mxu0 %v4380_v48 }
 0x1a2   :  { %3099 = vmatpush.bf16.msrb.mxu3 %v4954_v21 }
 0x1a3   :  { %3113 = vmatpush.bf16.msrb.mxu1 %v4962_v57 }
 0x1a4   :  { %2694 = vmatmul.bf16.vlgmr.msrb.gmra.mxu2 %v5410_v8  ;;  %2708 = vmatmul.bf16.vlgmr.msrb.gmra.mxu0 %v5412_v52 }
 0x1a5   :  { %2742 = vmatpush.bf16.msra.mxu2 %v4368_v33  ;;  %2756 = vmatpush.bf16.msra.mxu0 %v4496_v5  ;;  %v4949_v33 = vld [vmem:[#allocation11] sm:$0xff] }
 0x1a6   :  { %3100 = vmatpush.bf16.msrb.mxu3 %v4953_v23  ;;  %v4957_v5 = vld [vmem:[#allocation11 + $0x40] sm:$0xff] }
 0x1a7   :  { %3114 = vmatpush.bf16.msrb.mxu1 %v4961_v61 }
 0x1a9   :  { %2743 = vmatpush.bf16.msra.mxu2 %v4352_v38  ;;  %2757 = vmatpush.bf16.msra.mxu0 %v4480_v22  ;;  %v4980_v38 = vld [vmem:[#allocation11 + $0xf8] sm:$0xff] }
 0x1ab   :  { %3115 = vmatpush.bf16.msrb.mxu1 %v4960_v17  ;;  %v4968_v17 = vld [vmem:[#allocation11 + $0x98] sm:$0xff] }
 0x1ad   :  { %2744 = vmatpush.bf16.msra.mxu2 %v4336_v42  ;;  %2758 = vmatpush.bf16.msra.mxu0 %v4464_v44  ;;  %v2555_v58 = vpop.f32.mrf.mxu3 }
 0x1af   :  { %3116 = vmatpush.bf16.msrb.mxu1 %v4959_v26 }
 0x1b1   :  { %2745 = vmatpush.bf16.msra.mxu2 %v4320_v62  ;;  %2759 = vmatpush.bf16.msra.mxu0 %v4448_v55 }
 0x1b3   :  { %3117 = vmatpush.bf16.msrb.mxu1 %v4958_v29  ;;  %v4967_v29 = vld [vmem:[#allocation11 + $0x90] sm:$0xff] }
 0x1b5   :  { %2746 = vmatpush.bf16.msra.mxu2 %v4304_v2  ;;  %2760 = vmatpush.bf16.msra.mxu0 %v4432_v25  ;;  %v2557_v30 = vpop.f32.mrf.mxu3  ;;  %v2786_v2 = vperm.slane %v2784_v53, 0 }
 0x1b7   :  { %3118 = vmatpush.bf16.msrb.mxu1 %v4957_v5  ;;  %v2802_v9 = vunpack.c.l.bf16 %v2786_v2  ;;  %v4974_v5 = vld [vmem:[#allocation11 + $0xc8] sm:$0xff] }
 0x1b9   :  { %2747 = vmatpush.bf16.msra.mxu2 %v4288_v50  ;;  %2761 = vmatpush.bf16.msra.mxu0 %v4416_v7 }
 0x1bd   :  { %2748 = vmatpush.bf16.msra.mxu2 %v4272_v12  ;;  %2762 = vmatpush.bf16.msra.mxu0 %v4400_v11  ;;  %v2611_v35 = vpop.f32.mrf.mxu3 }
 0x1c1   :  { %2749 = vmatpush.bf16.msra.mxu2 %v4256_v1  ;;  %2763 = vmatpush.bf16.msra.mxu0 %v4384_v6 }
 0x1c4   :  { %2750 = vmatmul.bf16.vlgmr.msra.gmra.mxu2 %v5410_v8  ;;  %2764 = vmatmul.bf16.vlgmr.msra.gmra.mxu0 %v5412_v52  ;;  %v4952_v8 = vld [vmem:[#allocation11 + $0x18] sm:$0xff]  ;;  %v2569_v52 = vpop.f32.mrf.mxu1 }
 0x1c5   :  { %3101 = vmatpush.bf16.msrb.mxu3 %v4952_v8  ;;  %3125 = vmatpush.bf16.msrb.mxu2 %v4972_v14  ;;  %v2570_v39 = vadd.f32 %v2569_v52, %v2555_v58  ;;  %v2613_v55 = vpop.f32.mrf.mxu3  ;;  %v4976_v52 = vld [vmem:[#allocation11 + $0xd8] sm:$0xff] }
 0x1c6   :  { %3139 = vmatpush.bf16.msrb.mxu0 %v4980_v38 }
 0x1c9   :  { %3102 = vmatpush.bf16.msrb.mxu3 %v4951_v24  ;;  %3126 = vmatpush.bf16.msrb.mxu2 %v4971_v4 }
 0x1ca   :  { %3140 = vmatpush.bf16.msrb.mxu0 %v4979_v32 }
 0x1cc   :  { %v2571_v48 = vpop.f32.mrf.mxu1 }
 0x1cd   :  { %3103 = vmatpush.bf16.msrb.mxu3 %v4950_v28  ;;  %v2572_v63 = vadd.f32 %v2571_v48, %v2557_v30  ;;  %3127 = vmatpush.bf16.msrb.mxu2 %v4970_v41  ;;  %v2667_v24 = vpop.f32.mrf.mxu3  ;;  %v4975_v30 = vld [vmem:[#allocation11 + $0xd0] sm:$0xff] }
 0x1ce   :  { %3141 = vmatpush.bf16.msrb.mxu0 %v4978_v36 }
 0x1d1   :  { %3104 = vmatpush.bf16.msrb.mxu3 %v4949_v33  ;;  %3128 = vmatpush.bf16.msrb.mxu2 %v4969_v19  ;;  %v4966_v33 = vld [vmem:[#allocation11 + $0x88] sm:$0xff] }
 0x1d2   :  { %3142 = vmatpush.bf16.msrb.mxu0 %v4977_v20 }
 0x1d4   :  { %v2625_v22 = vpop.f32.mrf.mxu1 }
 0x1d5   :  { %v2626_v60 = vadd.f32 %v2625_v22, %v2611_v35  ;;  %3129 = vmatpush.bf16.msrb.mxu2 %v4968_v17  ;;  %v4973_v35 = vld [vmem:[#allocation11 + $0xc0] sm:$0xff] }
 0x1d6   :  { %3143 = vmatpush.bf16.msrb.mxu0 %v4976_v52 }
 0x1d9   :  { %3130 = vmatpush.bf16.msrb.mxu2 %v4967_v29 }
 0x1da   :  { %3144 = vmatpush.bf16.msrb.mxu0 %v4975_v30 }
 0x1dc   :  { %v2627_v0 = vpop.f32.mrf.mxu1 }
 0x1dd   :  { %v2628_v25 = vadd.f32 %v2627_v0, %v2613_v55  ;;  %3131 = vmatpush.bf16.msrb.mxu2 %v4966_v33 }
 0x1de   :  { %3145 = vmatpush.bf16.msrb.mxu0 %v4974_v5 }
 0x1e2   :  { %3146 = vmatpush.bf16.msrb.mxu0 %v4973_v35 }
 0x1e4   :  { %v2681_v28 = vpop.f32.mrf.mxu1 }
 0x1e5   :  { %v2682_v37 = vadd.f32 %v2681_v28, %v2667_v24 }
 0x1ec   :  { %v2683_v14 = vpop.f32.mrf.mxu1 }
 0x201   :  { %v2597_v27 = vpop.f32.mrf.mxu0 }
 0x207   :  { %v2583_v31 = vpop.f32.mrf.mxu2 }
 0x208   :  { %v2584_v47 = vadd.f32 %v2583_v31, %v2570_v39 }
 0x209   :  { %v2599_v40 = vpop.f32.mrf.mxu0 }
 0x20a   :  { %v2598_v56 = vadd.f32 %v2597_v27, %v2584_v47 }
 0x20f   :  { %v2585_v34 = vpop.f32.mrf.mxu2 }
 0x210   :  { %v2586_v51 = vadd.f32 %v2585_v34, %v2572_v63  ;;  %v4965_v34 = vld [vmem:[#allocation11 + $0x80] sm:$0xff] }
 0x211   :  { %v2653_v42 = vpop.f32.mrf.mxu0  ;;  %3132 = vmatpush.bf16.msrb.mxu2 %v4965_v34 }
 0x212   :  { %v2600_v54 = vadd.f32 %v2599_v40, %v2586_v51  ;;  %v2669_v40 = vpop.f32.mrf.mxu3 }
 0x213   :  { %v2684_v0 = vadd.f32 %v2683_v14, %v2669_v40 }
 0x217   :  { %v2639_v44 = vpop.f32.mrf.mxu2 }
 0x218   :  { %v2640_v13 = vadd.f32 %v2639_v44, %v2626_v60  ;;  %v2737_v60 = vpop.f32.mrf.mxu1  ;;  %v2780_v44 = vld [vmem:[#allocation1 + $0x1b] sm:$0xff] }
 0x219   :  { %v2655_v10 = vpop.f32.mrf.mxu0  ;;  %v2790_v55 = vpack.i.b16 %v2780_v44, %v2780_v44 }
 0x21a   :  { %v2654_v62 = vadd.f32 %v2653_v42, %v2640_v13  ;;  %v2723_v39 = vpop.f32.mrf.mxu3  ;;  %v2779_v42 = vld [vmem:[#allocation1 + $0x12] sm:$0xff] }
 0x21b   :  { %v2738_v59 = vadd.f32 %v2737_v60, %v2723_v39  ;;  %v2792_v51 = vperm.slane %v2790_v55, 0 }
 0x21c   :  { %v2770_v3 = vpack.c.bf16 %v2654_v62, %v2598_v56  ;;  %v2787_v62 = vpack.i.b16 %v2779_v42, %v2779_v42 }
 0x21e   :  { %v2793_v12 = vunpack.c.l.bf16 %v2770_v3  ;;  %v2794_v11 = vunpack.c.h.bf16 %v2770_v3 }
 0x21f   :  { %v2641_v50 = vpop.f32.mrf.mxu2 }
 0x220   :  { %v2642_v7 = vadd.f32 %v2641_v50, %v2628_v25  ;;  %v2805_v1 = vadd.f32 %v2801_v16, %v2793_v12  ;;  %v2806_v6 = vadd.f32 %v2802_v9, %v2794_v11  ;;  %v2739_v2 = vpop.f32.mrf.mxu1  ;;  %v2789_v25 = vperm.slane %v2787_v62, 0 }
 0x221   :  { %v2709_v31 = vpop.f32.mrf.mxu0 }
 0x222   :  { %v2656_v15 = vadd.f32 %v2655_v10, %v2642_v7  ;;  %v2825_v23 = vmax.f32 %v2805_v1, 0.0  ;;  %v2826_v61 = vmax.f32 %v2806_v6, 0.0  ;;  %v2725_v56 = vpop.f32.mrf.mxu3 }
 0x223   :  { %v2740_v3 = vadd.f32 %v2739_v2, %v2725_v56 }
 0x224   :  { %v2772_v46 = vpack.c.bf16 %v2656_v15, %v2600_v54 }
 0x226   :  { %v2797_v18 = vunpack.c.l.bf16 %v2772_v46  ;;  %v2798_v43 = vunpack.c.h.bf16 %v2772_v46 }
 0x227   :  { %v2695_v48 = vpop.f32.mrf.mxu2 }
 0x228   :  { %v2809_v21 = vadd.f32 %v2801_v16, %v2797_v18  ;;  %v2810_v57 = vadd.f32 %v2802_v9, %v2798_v43  ;;  %v2696_v49 = vadd.f32 %v2695_v48, %v2682_v37  ;;  %v2803_v16 = vunpack.c.l.bf16 %v2789_v25 }
 0x229   :  { %v2711_v38 = vpop.f32.mrf.mxu0  ;;  %v2804_v9 = vunpack.c.l.bf16 %v2792_v51 }
 0x22a   :  { %v2829_v58 = vmax.f32 %v2809_v21, 0.0  ;;  %v2830_v8 = vmax.f32 %v2810_v57, 0.0  ;;  %v2710_v45 = vadd.f32 %v2709_v31, %v2696_v49 }
 0x22c   :  { %v2833_v26 = vpack.c.bf16 %v2829_v58, %v2825_v23  ;;  %v2834_v27 = vpack.c.bf16 %v2830_v8, %v2826_v61  ;;  %v4999_v8 = vld [vmem:[%s5437_s6] ss:$0 sm:$0xff]  ;;  %s5198_s6 = smov [#allocation13]  }
 0x22d   :  { %s3179_s10 = sshll.u32 %s5198_s6, 4  ;;  %s3180_s10 = int_to_ptr.vmem [resolvable:$true] %s3179_s10 }
 0x22e   :  { %3105 = vmatmul.bf16.vlgmr.msrb.gmra.mxu3 %v2833_v26  ;;  %3119 = vmatmul.bf16.vlgmr.msrb.gmra.mxu1 %v2834_v27 }
 0x22f   :  { %v2697_v22 = vpop.f32.mrf.mxu2 }
 0x230   :  { %v2698_v4 = vadd.f32 %v2697_v22, %v2684_v0 }
 0x232   :  { %v2712_v54 = vadd.f32 %v2711_v38, %v2698_v4 }
 0x241   :  { %v2765_v47 = vpop.f32.mrf.mxu0 }
 0x247   :  { %v2751_v13 = vpop.f32.mrf.mxu2 }
 0x248   :  { %v2752_v53 = vadd.f32 %v2751_v13, %v2738_v59 }
 0x249   :  { %v2767_v10 = vpop.f32.mrf.mxu0 }
 0x24a   :  { %v2766_v63 = vadd.f32 %v2765_v47, %v2752_v53 }
 0x24c   :  { %v2771_v32 = vpack.c.bf16 %v2766_v63, %v2710_v45 }
 0x24e   :  { %v2795_v12 = vunpack.c.l.bf16 %v2771_v32  ;;  %v2796_v11 = vunpack.c.h.bf16 %v2771_v32 }
 0x24f   :  { %v2753_v50 = vpop.f32.mrf.mxu2 }
 0x250   :  { %v2754_v7 = vadd.f32 %v2753_v50, %v2740_v3  ;;  %v2807_v36 = vadd.f32 %v2803_v16, %v2795_v12  ;;  %v2808_v46 = vadd.f32 %v2804_v9, %v2796_v11 }
 0x252   :  { %v2768_v15 = vadd.f32 %v2767_v10, %v2754_v7  ;;  %v2827_v19 = vmax.f32 %v2807_v36, 0.0  ;;  %v2828_v20 = vmax.f32 %v2808_v46, 0.0 }
 0x254   :  { %v2773_v41 = vpack.c.bf16 %v2768_v15, %v2712_v54 }
 0x256   :  { %v2799_v1 = vunpack.c.l.bf16 %v2773_v41  ;;  %v2800_v6 = vunpack.c.h.bf16 %v2773_v41 }
 0x258   :  { %v2811_v18 = vadd.f32 %v2803_v16, %v2799_v1  ;;  %v2812_v43 = vadd.f32 %v2804_v9, %v2800_v6 }
 0x25a   :  { %v2831_v21 = vmax.f32 %v2811_v18, 0.0  ;;  %v2832_v57 = vmax.f32 %v2812_v43, 0.0 }
 0x25c   :  { %v2835_v23 = vpack.c.bf16 %v2831_v21, %v2827_v19  ;;  %v2836_v61 = vpack.c.bf16 %v2832_v57, %v2828_v20 }
 0x25e   :  { %3133 = vmatmul.bf16.vlgmr.msrb.gmra.mxu2 %v2835_v23  ;;  %3147 = vmatmul.bf16.vlgmr.msrb.gmra.mxu0 %v2836_v61 }
 0x2ab   :  { %v3120_v52 = vpop.f32.mrf.mxu1 }
 0x2b1   :  { %v3106_v58 = vpop.f32.mrf.mxu3 }
 0x2b2   :  { %v3107_v17 = vadd.f32 %v4999_v8, %v3106_v58 }
 0x2b3   :  { %v3122_v48 = vpop.f32.mrf.mxu1 }
 0x2b4   :  { %v3121_v26 = vadd.f32 %v3120_v52, %v3107_v17 }
 0x2b9   :  { %v3108_v24 = vpop.f32.mrf.mxu3 }
 0x2ba   :  { %v3109_v30 = vadd.f32 %v4999_v8, %v3108_v24 }
 0x2bc   :  { %v3123_v33 = vadd.f32 %v3122_v48, %v3109_v30 }
 0x2db   :  { %v3148_v27 = vpop.f32.mrf.mxu0 }
 0x2e1   :  { %v3134_v28 = vpop.f32.mrf.mxu2 }
 0x2e2   :  { %v3135_v29 = vadd.f32 %v3134_v28, %v3121_v26 }
 0x2e3   :  { %v3150_v34 = vpop.f32.mrf.mxu0 }
 0x2e4   :  { %v3149_v31 = vadd.f32 %v3148_v27, %v3135_v29 }
 0x2e6   :  { %3153 = vmax.xlane.f32.xlu0 %v3149_v31 }
 0x2e9   :  { %v3136_v5 = vpop.f32.mrf.mxu2 }
 0x2ea   :  { %v3137_v40 = vadd.f32 %v3136_v5, %v3123_v33 }
 0x2ec   :  { %v3151_v35 = vadd.f32 %v3150_v34, %v3137_v40 }
 0x2ee   :  { %3155 = vmax.xlane.f32.xlu0 %v3151_v35 }
 0x359   :  { %v3154_v14 = vpop.xlane.xlu0 %3153 }
 0x35a   :  { %v3157_v38 = vsub.f32 %v3149_v31, %v3154_v14 }
 0x35c   :  { %v3159_v22 = vmul.f32 1.442695, %v3157_v38 }
 0x35e   :  { %5000 = vpow2.f32 %v3159_v22 }
 0x361   :  { %v3156_v39 = vpop.xlane.xlu0 %3155 }
 0x362   :  { %v3158_v60 = vsub.f32 %v3151_v35, %v3156_v39 }
 0x364   :  { %v5001_v37 = vpop.eup %5000  ;;  %v3161_v59 = vmul.f32 1.442695, %v3158_v60 }
 0x365   :  { %3163 = vadd.xlane.f32.xlu1 %v5001_v37 }
 0x366   :  { %5002 = vpow2.f32 %v3161_v59 }
 0x36c   :  { %v5003_v42 = vpop.eup %5002 }
 0x36d   :  { %3165 = vadd.xlane.f32.xlu1 %v5003_v42 }
 0x3d8   :  { %v3164_v44 = vpop.xlane.xlu1 %3163 }
 0x3d9   :  { %5004 = vrcp.f32 %v3164_v44 }
 0x3df   :  { %v5005_v13 = vpop.eup %5004 }
 0x3e0   :  { %v3166_v47 = vpop.xlane.xlu1 %3165  ;;  %v3169_v62 = vmul.f32 %v5005_v13, %v5001_v37 }
 0x3e1   :  { %5006 = vrcp.f32 %v3166_v47 }
 0x3e7   :  { %v5007_v49 = vpop.eup %5006 }
 0x3e8   :  { %v3170_v53 = vmul.f32 %v5007_v49, %v5003_v42 }
 0x3ea   :  { %v4984_v55 = vpack.c.bf16 %v3170_v53, %v3169_v62 }
 0x3ec   :  { %4985 = vst [vmem:[#allocation13] sm:$0xff] %v4984_v55  }
 0x3ed   :  { %3187 = dma.vmem_to_hbm [thread:$0]  %s3180_s10, 128, %s3182_s13, [#allocation4], %s5196_s8, %s5196_s8, %s5197_s9  }
 0x3ee   :  { %5184 = dma.done.wait [#allocation4], 128  }
 0x3ef   :  { %5185 = vsyncadd [#allocation4], 4294967168 }
 0x3f0   :  { %3192 = vsyncpa [#allocation3], 1 }
 0x3f1   :  { %3193 = vsyncpa [#allocation6], 1 }
 0x3f2   :  { %3194 = vsyncpa [#allocation9], 1 }
 0x3f3   :  { %3195 = vsyncpa [#allocation12], 1 }
 0x3f4   :  { %3196 = vsyncpa [#allocation4], 1 }

</bundles_post_ra>
